<compile_context>
chip_gen: v7x
topology: tpu7x:2x2x1
jax: 0.10.0
libtpu: 0.0.40
codegen_flags: <defaults>
</compile_context>

<pallas_src>
import functools

import jax
import jax.numpy as jnp
from jax import lax
from jax.experimental import pallas as pl
from jax.experimental.pallas import tpu as pltpu

# Architecture constants from the PyTorch module.
KW = 64        # conv kernel width  (kernel_size=(1, 64))
PAD = 32       # conv padding along W (padding=(0, 32))
POOL = 4       # AvgPool2d kernel (1, 4), stride (1, 4)
BN_EPS = 1e-5  # BatchNorm2d default eps


def _eegnet_block_kernel(lhs_ref, w_ref, gamma_ref, beta_ref, o_ref,
                         *, M, W_OUT, W_POOL, C_OUT):
    # lhs_ref  : (M*W_OUT, KW*C_IN)  bf16 im2col rows (row = (m, w), col = (k, c))
    # w_ref    : (KW*C_IN, C_OUT)    bf16 conv taps flattened
    # gamma_ref: (1, C_OUT), beta_ref: (1, C_OUT)  f32
    # o_ref    : (M, W_POOL*C_OUT)   f32, lane-dense output slab

    # ---- Conv2d(kernel=(1,KW)) as one MXU matmul, f32 accumulation ----
    conv = jnp.dot(lhs_ref[...], w_ref[...],
                   preferred_element_type=jnp.float32)      # (M*W_OUT, C_OUT)

    # ---- BatchNorm2d, training mode: per-channel stats over (N,H,W) ----
    cnt = float(M * W_OUT)
    mean = jnp.sum(conv, axis=0, keepdims=True) * (1.0 / cnt)   # (1, C_OUT)
    d = conv - mean
    var = jnp.sum(d * d, axis=0, keepdims=True) * (1.0 / cnt)   # biased variance
    inv = lax.rsqrt(var + BN_EPS)
    scale = inv * gamma_ref[...]                                 # (1, C_OUT)
    y = d * scale + beta_ref[...]                                # (M*W_OUT, C_OUT)

    # ---- ELU (alpha = 1) ----
    y = jnp.where(y > 0.0, y, jnp.exp(y) - 1.0)

    # ---- AvgPool2d((1, POOL)), stride POOL, trailing remainder dropped ----
    # Statically unrolled (M*W_POOL = 32 tiny slices); the result is assembled
    # into a single lane-dense (M, W_POOL*C_OUT) block and stored once.
    rows = []
    for m in range(M):
        base = m * W_OUT
        parts = [
            jnp.mean(y[base + POOL * p: base + POOL * (p + 1), :],
                     axis=0, keepdims=True)                      # (1, C_OUT)
            for p in range(W_POOL)
        ]
        rows.append(jnp.concatenate(parts, axis=1))              # (1, W_POOL*C_OUT)
    o_ref[...] = jnp.concatenate(rows, axis=0)                   # (M, W_POOL*C_OUT)


def eegnet_block_forward(x, weight, gamma, beta):
    """x: NCHW (B, C_in, H, W); weight: (C_out, C_in, 1, KW); gamma/beta: (C_out,)."""
    B, C_in, H, W = x.shape
    C_out = weight.shape[0]
    W_pad = W + 2 * PAD
    W_out = W_pad - KW + 1
    W_pool = W_out // POOL
    M = B * H
    MW = M * W_out
    KC = KW * C_in

    # ---- Glue: layout plumbing only (no compute) ----
    # channels-last rows, zero-padded along W
    x_rows = jnp.transpose(x, (0, 2, 3, 1)).reshape(M, W, C_in)
    x_padded = jnp.pad(x_rows, ((0, 0), (PAD, PAD), (0, 0)))
    # im2col: patches[m, w, k, c] = x_padded[m, w+k, c]  ->  (M*W_out, KW*C_in)
    patches = jnp.stack([x_padded[:, k:k + W_out, :] for k in range(KW)], axis=2)
    lhs = patches.reshape(MW, KC).astype(jnp.bfloat16)
    # weight (C_out, C_in, 1, KW) -> (KW, C_in, C_out) -> (KW*C_in, C_out)
    w2d = jnp.transpose(weight[:, :, 0, :], (2, 1, 0)).reshape(KC, C_out)
    w2d = w2d.astype(jnp.bfloat16)
    gamma2 = gamma.reshape(1, C_out).astype(jnp.float32)
    beta2 = beta.reshape(1, C_out).astype(jnp.float32)

    kernel = functools.partial(
        _eegnet_block_kernel, M=M, W_OUT=W_out, W_POOL=W_pool, C_OUT=C_out)

    out = pl.pallas_call(
        kernel,
        out_shape=jax.ShapeDtypeStruct((M, W_pool * C_out), jnp.float32),
        grid=(1,),
        in_specs=[
            pl.BlockSpec((MW, KC), lambda i: (0, 0)),
            pl.BlockSpec((KC, C_out), lambda i: (0, 0)),
            pl.BlockSpec((1, C_out), lambda i: (0, 0)),
            pl.BlockSpec((1, C_out), lambda i: (0, 0)),
        ],
        out_specs=pl.BlockSpec((M, W_pool * C_out), lambda i: (0, 0)),
        compiler_params=pltpu.CompilerParams(
            dimension_semantics=("arbitrary",),
            vmem_limit_bytes=32 * 1024 * 1024),
    )(lhs, w2d, gamma2, beta2)

    # Back to NCHW: (M, W_pool*C_out) -> (B, C_out, H, W_pool)
    out = out.reshape(B, H, W_pool, C_out)
    return jnp.transpose(out, (0, 3, 1, 2))


def reference_forward(x, weight, gamma, beta):
    """Pure-JAX reference (same semantics as the PyTorch module in train mode)."""
    conv = lax.conv_general_dilated(
        x, weight, window_strides=(1, 1), padding=((0, 0), (PAD, PAD)),
        dimension_numbers=("NCHW", "OIHW", "NCHW"),
        precision=lax.Precision.HIGHEST)
    mean = jnp.mean(conv, axis=(0, 2, 3), keepdims=True)
    var = jnp.mean((conv - mean) ** 2, axis=(0, 2, 3), keepdims=True)
    y = (conv - mean) * lax.rsqrt(var + BN_EPS)
    y = y * gamma.reshape(1, -1, 1, 1) + beta.reshape(1, -1, 1, 1)
    y = jnp.where(y > 0, y, jnp.exp(y) - 1.0)
    Bb, C, Hh, Wc = y.shape
    Wp = Wc // POOL
    return y[..., :Wp * POOL].reshape(Bb, C, Hh, Wp, POOL).mean(-1)


if __name__ == "__main__":
    # Small shapes consistent with the module (EEG: channels=19 -> C_in,
    # hidden_size=64 -> C_out, small batch / spatial / time dims).
    B, C_IN, H, W = 2, 19, 2, 32
    C_OUT = 64

    key = jax.random.PRNGKey(0)
    kx, kw, kg, kb = jax.random.split(key, 4)

    x = jax.random.normal(kx, (B, C_IN, H, W), dtype=jnp.float32)
    weight = jax.random.normal(kw, (C_OUT, C_IN, 1, KW), dtype=jnp.float32)
    weight = weight * (1.0 / jnp.sqrt(float(C_IN * KW)))
    gamma = 1.0 + 0.1 * jax.random.normal(kg, (C_OUT,), dtype=jnp.float32)
    beta = 0.1 * jax.random.normal(kb, (C_OUT,), dtype=jnp.float32)

    out = jax.block_until_ready(eegnet_block_forward(x, weight, gamma, beta))

    # Tight check: feed the reference the same bf16-rounded conv operands the
    # kernel uses (MXU does bf16 x bf16 -> f32); only accumulation order differs.
    x_bf = x.astype(jnp.bfloat16).astype(jnp.float32)
    w_bf = weight.astype(jnp.bfloat16).astype(jnp.float32)
    ref_bf = jax.block_until_ready(reference_forward(x_bf, w_bf, gamma, beta))
    assert out.shape == ref_bf.shape, (out.shape, ref_bf.shape)
    assert jnp.allclose(out, ref_bf, rtol=1e-3, atol=1e-3), (
        float(jnp.max(jnp.abs(out - ref_bf))))

    # Loose check vs the full-f32 reference: bf16 conv operands with f32
    # accumulation give ~1e-3-level deviations, well inside 2e-2.
    ref = jax.block_until_ready(reference_forward(x, weight, gamma, beta))
    assert jnp.allclose(out, ref, rtol=2e-2, atol=2e-2), (
        float(jnp.max(jnp.abs(out - ref))))

    print("KERNEL_OK")
</pallas_src>

<mosaic_0001>
module attributes {stable_mosaic.version = 11 : i64} {
  func.func @_eegnet_block_kernel(%arg0: i32, %arg1: memref<132x1216xbf16, #tpu.memory_space<vmem>>, %arg2: memref<1216x64xbf16, #tpu.memory_space<vmem>>, %arg3: memref<1x64xf32, #tpu.memory_space<vmem>>, %arg4: memref<1x64xf32, #tpu.memory_space<vmem>>, %arg5: memref<4x512xf32, #tpu.memory_space<vmem>>) attributes {dimension_semantics = [#tpu.dimension_semantics<arbitrary>], iteration_bounds = array<i64: 1>, scalar_prefetch = 0 : i64, scratch_operands = 0 : i64, tpu.core_type = #tpu.core_type<tc>, window_params = [{pipeline_mode = #tpu.pipeline_mode<synchronous>, transform_indices = @transform_0, window_bounds = array<i64: 132, 1216>}, {pipeline_mode = #tpu.pipeline_mode<synchronous>, transform_indices = @transform_1, window_bounds = array<i64: 1216, 64>}, {pipeline_mode = #tpu.pipeline_mode<synchronous>, transform_indices = @transform_2, window_bounds = array<i64: 1, 64>}, {pipeline_mode = #tpu.pipeline_mode<synchronous>, transform_indices = @transform_3, window_bounds = array<i64: 1, 64>}, {pipeline_mode = #tpu.pipeline_mode<synchronous>, transform_indices = @transform_4, window_bounds = array<i64: 4, 512>}]} {
    %c0 = arith.constant 0 : index
    %c0_0 = arith.constant 0 : index
    %0 = vector.load %arg1[%c0, %c0_0] : memref<132x1216xbf16, #tpu.memory_space<vmem>>, vector<132x1216xbf16>
    %c0_1 = arith.constant 0 : index
    %c0_2 = arith.constant 0 : index
    %1 = vector.load %arg2[%c0_1, %c0_2] : memref<1216x64xbf16, #tpu.memory_space<vmem>>, vector<1216x64xbf16>
    %cst = arith.constant dense<0.000000e+00> : vector<132x64xf32>
    %2 = tpu.matmul %0, %1, %cst {dimension_numbers = #tpu.dot_dimension_numbers<[1], [0], [0], [1], [0, 0, 1, 1], [], []>} : vector<132x1216xbf16>, vector<1216x64xbf16>, vector<132x64xf32> -> vector<132x64xf32>
    %cst_3 = arith.constant dense<0.000000e+00> : vector<64xf32>
    %3 = vector.multi_reduction <add>, %2, %cst_3 [0] : vector<132x64xf32> to vector<64xf32>
    %4 = vector.shape_cast %3 : vector<64xf32> to vector<1x64xf32>
    %cst_4 = arith.constant 0.0075757578 : f32
    %5 = vector.broadcast %cst_4 : f32 to vector<1x64xf32>
    %6 = arith.mulf %4, %5 : vector<1x64xf32>
    %7 = vector.broadcast %6 : vector<1x64xf32> to vector<132x64xf32>
    %8 = arith.subf %2, %7 : vector<132x64xf32>
    %9 = arith.mulf %8, %8 : vector<132x64xf32>
    %cst_5 = arith.constant dense<0.000000e+00> : vector<64xf32>
    %10 = vector.multi_reduction <add>, %9, %cst_5 [0] : vector<132x64xf32> to vector<64xf32>
    %11 = vector.shape_cast %10 : vector<64xf32> to vector<1x64xf32>
    %cst_6 = arith.constant 0.0075757578 : f32
    %12 = vector.broadcast %cst_6 : f32 to vector<1x64xf32>
    %13 = arith.mulf %11, %12 : vector<1x64xf32>
    %cst_7 = arith.constant 9.99999974E-6 : f32
    %14 = vector.broadcast %cst_7 : f32 to vector<1x64xf32>
    %15 = arith.addf %13, %14 : vector<1x64xf32>
    %16 = math.rsqrt %15 : vector<1x64xf32>
    %c0_8 = arith.constant 0 : index
    %c0_9 = arith.constant 0 : index
    %17 = vector.load %arg3[%c0_8, %c0_9] : memref<1x64xf32, #tpu.memory_space<vmem>>, vector<1x64xf32>
    %18 = arith.mulf %16, %17 : vector<1x64xf32>
    %19 = vector.broadcast %18 : vector<1x64xf32> to vector<132x64xf32>
    %20 = arith.mulf %8, %19 : vector<132x64xf32>
    %c0_10 = arith.constant 0 : index
    %c0_11 = arith.constant 0 : index
    %21 = vector.load %arg4[%c0_10, %c0_11] : memref<1x64xf32, #tpu.memory_space<vmem>>, vector<1x64xf32>
    %22 = vector.broadcast %21 : vector<1x64xf32> to vector<132x64xf32>
    %23 = arith.addf %20, %22 : vector<132x64xf32>
    %cst_12 = arith.constant 0.000000e+00 : f32
    %24 = vector.broadcast %cst_12 : f32 to vector<132x64xf32>
    %25 = arith.cmpf ogt, %23, %24 : vector<132x64xf32>
    %26 = math.exp %23 : vector<132x64xf32>
    %cst_13 = arith.constant 1.000000e+00 : f32
    %27 = vector.broadcast %cst_13 : f32 to vector<132x64xf32>
    %28 = arith.subf %26, %27 : vector<132x64xf32>
    %29 = arith.select %25, %23, %28 : vector<132x64xi1>, vector<132x64xf32>
    %30 = vector.extract_strided_slice %29 {offsets = [0, 0], sizes = [4, 64], strides = [1, 1]} : vector<132x64xf32> to vector<4x64xf32>
    %cst_14 = arith.constant dense<0.000000e+00> : vector<64xf32>
    %31 = vector.multi_reduction <add>, %30, %cst_14 [0] : vector<4x64xf32> to vector<64xf32>
    %32 = vector.shape_cast %31 : vector<64xf32> to vector<1x64xf32>
    %cst_15 = arith.constant 4.000000e+00 : f32
    %33 = vector.broadcast %cst_15 : f32 to vector<1x64xf32>
    %34 = arith.divf %32, %33 : vector<1x64xf32>
    %35 = vector.extract_strided_slice %29 {offsets = [4, 0], sizes = [4, 64], strides = [1, 1]} : vector<132x64xf32> to vector<4x64xf32>
    %cst_16 = arith.constant dense<0.000000e+00> : vector<64xf32>
    %36 = vector.multi_reduction <add>, %35, %cst_16 [0] : vector<4x64xf32> to vector<64xf32>
    %37 = vector.shape_cast %36 : vector<64xf32> to vector<1x64xf32>
    %cst_17 = arith.constant 4.000000e+00 : f32
    %38 = vector.broadcast %cst_17 : f32 to vector<1x64xf32>
    %39 = arith.divf %37, %38 : vector<1x64xf32>
    %40 = vector.extract_strided_slice %29 {offsets = [8, 0], sizes = [4, 64], strides = [1, 1]} : vector<132x64xf32> to vector<4x64xf32>
    %cst_18 = arith.constant dense<0.000000e+00> : vector<64xf32>
    %41 = vector.multi_reduction <add>, %40, %cst_18 [0] : vector<4x64xf32> to vector<64xf32>
    %42 = vector.shape_cast %41 : vector<64xf32> to vector<1x64xf32>
    %cst_19 = arith.constant 4.000000e+00 : f32
    %43 = vector.broadcast %cst_19 : f32 to vector<1x64xf32>
    %44 = arith.divf %42, %43 : vector<1x64xf32>
    %45 = vector.extract_strided_slice %29 {offsets = [12, 0], sizes = [4, 64], strides = [1, 1]} : vector<132x64xf32> to vector<4x64xf32>
    %cst_20 = arith.constant dense<0.000000e+00> : vector<64xf32>
    %46 = vector.multi_reduction <add>, %45, %cst_20 [0] : vector<4x64xf32> to vector<64xf32>
    %47 = vector.shape_cast %46 : vector<64xf32> to vector<1x64xf32>
    %cst_21 = arith.constant 4.000000e+00 : f32
    %48 = vector.broadcast %cst_21 : f32 to vector<1x64xf32>
    %49 = arith.divf %47, %48 : vector<1x64xf32>
    %50 = vector.extract_strided_slice %29 {offsets = [16, 0], sizes = [4, 64], strides = [1, 1]} : vector<132x64xf32> to vector<4x64xf32>
    %cst_22 = arith.constant dense<0.000000e+00> : vector<64xf32>
    %51 = vector.multi_reduction <add>, %50, %cst_22 [0] : vector<4x64xf32> to vector<64xf32>
    %52 = vector.shape_cast %51 : vector<64xf32> to vector<1x64xf32>
    %cst_23 = arith.constant 4.000000e+00 : f32
    %53 = vector.broadcast %cst_23 : f32 to vector<1x64xf32>
    %54 = arith.divf %52, %53 : vector<1x64xf32>
    %55 = vector.extract_strided_slice %29 {offsets = [20, 0], sizes = [4, 64], strides = [1, 1]} : vector<132x64xf32> to vector<4x64xf32>
    %cst_24 = arith.constant dense<0.000000e+00> : vector<64xf32>
    %56 = vector.multi_reduction <add>, %55, %cst_24 [0] : vector<4x64xf32> to vector<64xf32>
    %57 = vector.shape_cast %56 : vector<64xf32> to vector<1x64xf32>
    %cst_25 = arith.constant 4.000000e+00 : f32
    %58 = vector.broadcast %cst_25 : f32 to vector<1x64xf32>
    %59 = arith.divf %57, %58 : vector<1x64xf32>
    %60 = vector.extract_strided_slice %29 {offsets = [24, 0], sizes = [4, 64], strides = [1, 1]} : vector<132x64xf32> to vector<4x64xf32>
    %cst_26 = arith.constant dense<0.000000e+00> : vector<64xf32>
    %61 = vector.multi_reduction <add>, %60, %cst_26 [0] : vector<4x64xf32> to vector<64xf32>
    %62 = vector.shape_cast %61 : vector<64xf32> to vector<1x64xf32>
    %cst_27 = arith.constant 4.000000e+00 : f32
    %63 = vector.broadcast %cst_27 : f32 to vector<1x64xf32>
    %64 = arith.divf %62, %63 : vector<1x64xf32>
    %65 = vector.extract_strided_slice %29 {offsets = [28, 0], sizes = [4, 64], strides = [1, 1]} : vector<132x64xf32> to vector<4x64xf32>
    %cst_28 = arith.constant dense<0.000000e+00> : vector<64xf32>
    %66 = vector.multi_reduction <add>, %65, %cst_28 [0] : vector<4x64xf32> to vector<64xf32>
    %67 = vector.shape_cast %66 : vector<64xf32> to vector<1x64xf32>
    %cst_29 = arith.constant 4.000000e+00 : f32
    %68 = vector.broadcast %cst_29 : f32 to vector<1x64xf32>
    %69 = arith.divf %67, %68 : vector<1x64xf32>
    %70 = tpu.concatenate %34, %39, %44, %49, %54, %59, %64, %69 in 1 : vector<1x64xf32>, vector<1x64xf32>, vector<1x64xf32>, vector<1x64xf32>, vector<1x64xf32>, vector<1x64xf32>, vector<1x64xf32>, vector<1x64xf32> -> vector<1x512xf32>
    %71 = vector.extract_strided_slice %29 {offsets = [33, 0], sizes = [4, 64], strides = [1, 1]} : vector<132x64xf32> to vector<4x64xf32>
    %cst_30 = arith.constant dense<0.000000e+00> : vector<64xf32>
    %72 = vector.multi_reduction <add>, %71, %cst_30 [0] : vector<4x64xf32> to vector<64xf32>
    %73 = vector.shape_cast %72 : vector<64xf32> to vector<1x64xf32>
    %cst_31 = arith.constant 4.000000e+00 : f32
    %74 = vector.broadcast %cst_31 : f32 to vector<1x64xf32>
    %75 = arith.divf %73, %74 : vector<1x64xf32>
    %76 = vector.extract_strided_slice %29 {offsets = [37, 0], sizes = [4, 64], strides = [1, 1]} : vector<132x64xf32> to vector<4x64xf32>
    %cst_32 = arith.constant dense<0.000000e+00> : vector<64xf32>
    %77 = vector.multi_reduction <add>, %76, %cst_32 [0] : vector<4x64xf32> to vector<64xf32>
    %78 = vector.shape_cast %77 : vector<64xf32> to vector<1x64xf32>
    %cst_33 = arith.constant 4.000000e+00 : f32
    %79 = vector.broadcast %cst_33 : f32 to vector<1x64xf32>
    %80 = arith.divf %78, %79 : vector<1x64xf32>
    %81 = vector.extract_strided_slice %29 {offsets = [41, 0], sizes = [4, 64], strides = [1, 1]} : vector<132x64xf32> to vector<4x64xf32>
    %cst_34 = arith.constant dense<0.000000e+00> : vector<64xf32>
    %82 = vector.multi_reduction <add>, %81, %cst_34 [0] : vector<4x64xf32> to vector<64xf32>
    %83 = vector.shape_cast %82 : vector<64xf32> to vector<1x64xf32>
    %cst_35 = arith.constant 4.000000e+00 : f32
    %84 = vector.broadcast %cst_35 : f32 to vector<1x64xf32>
    %85 = arith.divf %83, %84 : vector<1x64xf32>
    %86 = vector.extract_strided_slice %29 {offsets = [45, 0], sizes = [4, 64], strides = [1, 1]} : vector<132x64xf32> to vector<4x64xf32>
    %cst_36 = arith.constant dense<0.000000e+00> : vector<64xf32>
    %87 = vector.multi_reduction <add>, %86, %cst_36 [0] : vector<4x64xf32> to vector<64xf32>
    %88 = vector.shape_cast %87 : vector<64xf32> to vector<1x64xf32>
    %cst_37 = arith.constant 4.000000e+00 : f32
    %89 = vector.broadcast %cst_37 : f32 to vector<1x64xf32>
    %90 = arith.divf %88, %89 : vector<1x64xf32>
    %91 = vector.extract_strided_slice %29 {offsets = [49, 0], sizes = [4, 64], strides = [1, 1]} : vector<132x64xf32> to vector<4x64xf32>
    %cst_38 = arith.constant dense<0.000000e+00> : vector<64xf32>
    %92 = vector.multi_reduction <add>, %91, %cst_38 [0] : vector<4x64xf32> to vector<64xf32>
    %93 = vector.shape_cast %92 : vector<64xf32> to vector<1x64xf32>
    %cst_39 = arith.constant 4.000000e+00 : f32
    %94 = vector.broadcast %cst_39 : f32 to vector<1x64xf32>
    %95 = arith.divf %93, %94 : vector<1x64xf32>
    %96 = vector.extract_strided_slice %29 {offsets = [53, 0], sizes = [4, 64], strides = [1, 1]} : vector<132x64xf32> to vector<4x64xf32>
    %cst_40 = arith.constant dense<0.000000e+00> : vector<64xf32>
    %97 = vector.multi_reduction <add>, %96, %cst_40 [0] : vector<4x64xf32> to vector<64xf32>
    %98 = vector.shape_cast %97 : vector<64xf32> to vector<1x64xf32>
    %cst_41 = arith.constant 4.000000e+00 : f32
    %99 = vector.broadcast %cst_41 : f32 to vector<1x64xf32>
    %100 = arith.divf %98, %99 : vector<1x64xf32>
    %101 = vector.extract_strided_slice %29 {offsets = [57, 0], sizes = [4, 64], strides = [1, 1]} : vector<132x64xf32> to vector<4x64xf32>
    %cst_42 = arith.constant dense<0.000000e+00> : vector<64xf32>
    %102 = vector.multi_reduction <add>, %101, %cst_42 [0] : vector<4x64xf32> to vector<64xf32>
    %103 = vector.shape_cast %102 : vector<64xf32> to vector<1x64xf32>
    %cst_43 = arith.constant 4.000000e+00 : f32
    %104 = vector.broadcast %cst_43 : f32 to vector<1x64xf32>
    %105 = arith.divf %103, %104 : vector<1x64xf32>
    %106 = vector.extract_strided_slice %29 {offsets = [61, 0], sizes = [4, 64], strides = [1, 1]} : vector<132x64xf32> to vector<4x64xf32>
    %cst_44 = arith.constant dense<0.000000e+00> : vector<64xf32>
    %107 = vector.multi_reduction <add>, %106, %cst_44 [0] : vector<4x64xf32> to vector<64xf32>
    %108 = vector.shape_cast %107 : vector<64xf32> to vector<1x64xf32>
    %cst_45 = arith.constant 4.000000e+00 : f32
    %109 = vector.broadcast %cst_45 : f32 to vector<1x64xf32>
    %110 = arith.divf %108, %109 : vector<1x64xf32>
    %111 = tpu.concatenate %75, %80, %85, %90, %95, %100, %105, %110 in 1 : vector<1x64xf32>, vector<1x64xf32>, vector<1x64xf32>, vector<1x64xf32>, vector<1x64xf32>, vector<1x64xf32>, vector<1x64xf32>, vector<1x64xf32> -> vector<1x512xf32>
    %112 = vector.extract_strided_slice %29 {offsets = [66, 0], sizes = [4, 64], strides = [1, 1]} : vector<132x64xf32> to vector<4x64xf32>
    %cst_46 = arith.constant dense<0.000000e+00> : vector<64xf32>
    %113 = vector.multi_reduction <add>, %112, %cst_46 [0] : vector<4x64xf32> to vector<64xf32>
    %114 = vector.shape_cast %113 : vector<64xf32> to vector<1x64xf32>
    %cst_47 = arith.constant 4.000000e+00 : f32
    %115 = vector.broadcast %cst_47 : f32 to vector<1x64xf32>
    %116 = arith.divf %114, %115 : vector<1x64xf32>
    %117 = vector.extract_strided_slice %29 {offsets = [70, 0], sizes = [4, 64], strides = [1, 1]} : vector<132x64xf32> to vector<4x64xf32>
    %cst_48 = arith.constant dense<0.000000e+00> : vector<64xf32>
    %118 = vector.multi_reduction <add>, %117, %cst_48 [0] : vector<4x64xf32> to vector<64xf32>
    %119 = vector.shape_cast %118 : vector<64xf32> to vector<1x64xf32>
    %cst_49 = arith.constant 4.000000e+00 : f32
    %120 = vector.broadcast %cst_49 : f32 to vector<1x64xf32>
    %121 = arith.divf %119, %120 : vector<1x64xf32>
    %122 = vector.extract_strided_slice %29 {offsets = [74, 0], sizes = [4, 64], strides = [1, 1]} : vector<132x64xf32> to vector<4x64xf32>
    %cst_50 = arith.constant dense<0.000000e+00> : vector<64xf32>
    %123 = vector.multi_reduction <add>, %122, %cst_50 [0] : vector<4x64xf32> to vector<64xf32>
    %124 = vector.shape_cast %123 : vector<64xf32> to vector<1x64xf32>
    %cst_51 = arith.constant 4.000000e+00 : f32
    %125 = vector.broadcast %cst_51 : f32 to vector<1x64xf32>
    %126 = arith.divf %124, %125 : vector<1x64xf32>
    %127 = vector.extract_strided_slice %29 {offsets = [78, 0], sizes = [4, 64], strides = [1, 1]} : vector<132x64xf32> to vector<4x64xf32>
    %cst_52 = arith.constant dense<0.000000e+00> : vector<64xf32>
    %128 = vector.multi_reduction <add>, %127, %cst_52 [0] : vector<4x64xf32> to vector<64xf32>
    %129 = vector.shape_cast %128 : vector<64xf32> to vector<1x64xf32>
    %cst_53 = arith.constant 4.000000e+00 : f32
    %130 = vector.broadcast %cst_53 : f32 to vector<1x64xf32>
    %131 = arith.divf %129, %130 : vector<1x64xf32>
    %132 = vector.extract_strided_slice %29 {offsets = [82, 0], sizes = [4, 64], strides = [1, 1]} : vector<132x64xf32> to vector<4x64xf32>
    %cst_54 = arith.constant dense<0.000000e+00> : vector<64xf32>
    %133 = vector.multi_reduction <add>, %132, %cst_54 [0] : vector<4x64xf32> to vector<64xf32>
    %134 = vector.shape_cast %133 : vector<64xf32> to vector<1x64xf32>
    %cst_55 = arith.constant 4.000000e+00 : f32
    %135 = vector.broadcast %cst_55 : f32 to vector<1x64xf32>
    %136 = arith.divf %134, %135 : vector<1x64xf32>
    %137 = vector.extract_strided_slice %29 {offsets = [86, 0], sizes = [4, 64], strides = [1, 1]} : vector<132x64xf32> to vector<4x64xf32>
    %cst_56 = arith.constant dense<0.000000e+00> : vector<64xf32>
    %138 = vector.multi_reduction <add>, %137, %cst_56 [0] : vector<4x64xf32> to vector<64xf32>
    %139 = vector.shape_cast %138 : vector<64xf32> to vector<1x64xf32>
    %cst_57 = arith.constant 4.000000e+00 : f32
    %140 = vector.broadcast %cst_57 : f32 to vector<1x64xf32>
    %141 = arith.divf %139, %140 : vector<1x64xf32>
    %142 = vector.extract_strided_slice %29 {offsets = [90, 0], sizes = [4, 64], strides = [1, 1]} : vector<132x64xf32> to vector<4x64xf32>
    %cst_58 = arith.constant dense<0.000000e+00> : vector<64xf32>
    %143 = vector.multi_reduction <add>, %142, %cst_58 [0] : vector<4x64xf32> to vector<64xf32>
    %144 = vector.shape_cast %143 : vector<64xf32> to vector<1x64xf32>
    %cst_59 = arith.constant 4.000000e+00 : f32
    %145 = vector.broadcast %cst_59 : f32 to vector<1x64xf32>
    %146 = arith.divf %144, %145 : vector<1x64xf32>
    %147 = vector.extract_strided_slice %29 {offsets = [94, 0], sizes = [4, 64], strides = [1, 1]} : vector<132x64xf32> to vector<4x64xf32>
    %cst_60 = arith.constant dense<0.000000e+00> : vector<64xf32>
    %148 = vector.multi_reduction <add>, %147, %cst_60 [0] : vector<4x64xf32> to vector<64xf32>
    %149 = vector.shape_cast %148 : vector<64xf32> to vector<1x64xf32>
    %cst_61 = arith.constant 4.000000e+00 : f32
    %150 = vector.broadcast %cst_61 : f32 to vector<1x64xf32>
    %151 = arith.divf %149, %150 : vector<1x64xf32>
    %152 = tpu.concatenate %116, %121, %126, %131, %136, %141, %146, %151 in 1 : vector<1x64xf32>, vector<1x64xf32>, vector<1x64xf32>, vector<1x64xf32>, vector<1x64xf32>, vector<1x64xf32>, vector<1x64xf32>, vector<1x64xf32> -> vector<1x512xf32>
    %153 = vector.extract_strided_slice %29 {offsets = [99, 0], sizes = [4, 64], strides = [1, 1]} : vector<132x64xf32> to vector<4x64xf32>
    %cst_62 = arith.constant dense<0.000000e+00> : vector<64xf32>
    %154 = vector.multi_reduction <add>, %153, %cst_62 [0] : vector<4x64xf32> to vector<64xf32>
    %155 = vector.shape_cast %154 : vector<64xf32> to vector<1x64xf32>
    %cst_63 = arith.constant 4.000000e+00 : f32
    %156 = vector.broadcast %cst_63 : f32 to vector<1x64xf32>
    %157 = arith.divf %155, %156 : vector<1x64xf32>
    %158 = vector.extract_strided_slice %29 {offsets = [103, 0], sizes = [4, 64], strides = [1, 1]} : vector<132x64xf32> to vector<4x64xf32>
    %cst_64 = arith.constant dense<0.000000e+00> : vector<64xf32>
    %159 = vector.multi_reduction <add>, %158, %cst_64 [0] : vector<4x64xf32> to vector<64xf32>
    %160 = vector.shape_cast %159 : vector<64xf32> to vector<1x64xf32>
    %cst_65 = arith.constant 4.000000e+00 : f32
    %161 = vector.broadcast %cst_65 : f32 to vector<1x64xf32>
    %162 = arith.divf %160, %161 : vector<1x64xf32>
    %163 = vector.extract_strided_slice %29 {offsets = [107, 0], sizes = [4, 64], strides = [1, 1]} : vector<132x64xf32> to vector<4x64xf32>
    %cst_66 = arith.constant dense<0.000000e+00> : vector<64xf32>
    %164 = vector.multi_reduction <add>, %163, %cst_66 [0] : vector<4x64xf32> to vector<64xf32>
    %165 = vector.shape_cast %164 : vector<64xf32> to vector<1x64xf32>
    %cst_67 = arith.constant 4.000000e+00 : f32
    %166 = vector.broadcast %cst_67 : f32 to vector<1x64xf32>
    %167 = arith.divf %165, %166 : vector<1x64xf32>
    %168 = vector.extract_strided_slice %29 {offsets = [111, 0], sizes = [4, 64], strides = [1, 1]} : vector<132x64xf32> to vector<4x64xf32>
    %cst_68 = arith.constant dense<0.000000e+00> : vector<64xf32>
    %169 = vector.multi_reduction <add>, %168, %cst_68 [0] : vector<4x64xf32> to vector<64xf32>
    %170 = vector.shape_cast %169 : vector<64xf32> to vector<1x64xf32>
    %cst_69 = arith.constant 4.000000e+00 : f32
    %171 = vector.broadcast %cst_69 : f32 to vector<1x64xf32>
    %172 = arith.divf %170, %171 : vector<1x64xf32>
    %173 = vector.extract_strided_slice %29 {offsets = [115, 0], sizes = [4, 64], strides = [1, 1]} : vector<132x64xf32> to vector<4x64xf32>
    %cst_70 = arith.constant dense<0.000000e+00> : vector<64xf32>
    %174 = vector.multi_reduction <add>, %173, %cst_70 [0] : vector<4x64xf32> to vector<64xf32>
    %175 = vector.shape_cast %174 : vector<64xf32> to vector<1x64xf32>
    %cst_71 = arith.constant 4.000000e+00 : f32
    %176 = vector.broadcast %cst_71 : f32 to vector<1x64xf32>
    %177 = arith.divf %175, %176 : vector<1x64xf32>
    %178 = vector.extract_strided_slice %29 {offsets = [119, 0], sizes = [4, 64], strides = [1, 1]} : vector<132x64xf32> to vector<4x64xf32>
    %cst_72 = arith.constant dense<0.000000e+00> : vector<64xf32>
    %179 = vector.multi_reduction <add>, %178, %cst_72 [0] : vector<4x64xf32> to vector<64xf32>
    %180 = vector.shape_cast %179 : vector<64xf32> to vector<1x64xf32>
    %cst_73 = arith.constant 4.000000e+00 : f32
    %181 = vector.broadcast %cst_73 : f32 to vector<1x64xf32>
    %182 = arith.divf %180, %181 : vector<1x64xf32>
    %183 = vector.extract_strided_slice %29 {offsets = [123, 0], sizes = [4, 64], strides = [1, 1]} : vector<132x64xf32> to vector<4x64xf32>
    %cst_74 = arith.constant dense<0.000000e+00> : vector<64xf32>
    %184 = vector.multi_reduction <add>, %183, %cst_74 [0] : vector<4x64xf32> to vector<64xf32>
    %185 = vector.shape_cast %184 : vector<64xf32> to vector<1x64xf32>
    %cst_75 = arith.constant 4.000000e+00 : f32
    %186 = vector.broadcast %cst_75 : f32 to vector<1x64xf32>
    %187 = arith.divf %185, %186 : vector<1x64xf32>
    %188 = vector.extract_strided_slice %29 {offsets = [127, 0], sizes = [4, 64], strides = [1, 1]} : vector<132x64xf32> to vector<4x64xf32>
    %cst_76 = arith.constant dense<0.000000e+00> : vector<64xf32>
    %189 = vector.multi_reduction <add>, %188, %cst_76 [0] : vector<4x64xf32> to vector<64xf32>
    %190 = vector.shape_cast %189 : vector<64xf32> to vector<1x64xf32>
    %cst_77 = arith.constant 4.000000e+00 : f32
    %191 = vector.broadcast %cst_77 : f32 to vector<1x64xf32>
    %192 = arith.divf %190, %191 : vector<1x64xf32>
    %193 = tpu.concatenate %157, %162, %167, %172, %177, %182, %187, %192 in 1 : vector<1x64xf32>, vector<1x64xf32>, vector<1x64xf32>, vector<1x64xf32>, vector<1x64xf32>, vector<1x64xf32>, vector<1x64xf32>, vector<1x64xf32> -> vector<1x512xf32>
    %194 = tpu.concatenate %70, %111, %152, %193 in 0 : vector<1x512xf32>, vector<1x512xf32>, vector<1x512xf32>, vector<1x512xf32> -> vector<4x512xf32>
    %c0_78 = arith.constant 0 : index
    %c0_79 = arith.constant 0 : index
    %195 = vector.load %arg5[%c0_78, %c0_79] : memref<4x512xf32, #tpu.memory_space<vmem>>, vector<4x512xf32>
    tpu.vector_store %arg5[%c0_78, %c0_79], %194 {strides = array<i32>} : memref<4x512xf32, #tpu.memory_space<vmem>>, vector<4x512xf32>,
    return
  }
  func.func @transform_0(%arg0: i32) -> (i32, i32) {
    %c0_i32 = arith.constant 0 : i32
    %c0_i32_0 = arith.constant 0 : i32
    %c0_i32_1 = arith.constant 0 : i32
    return %c0_i32, %c0_i32_0 : i32, i32
  }
  func.func @transform_1(%arg0: i32) -> (i32, i32) {
    %c0_i32 = arith.constant 0 : i32
    %c0_i32_0 = arith.constant 0 : i32
    %c0_i32_1 = arith.constant 0 : i32
    return %c0_i32, %c0_i32_0 : i32, i32
  }
  func.func @transform_2(%arg0: i32) -> (i32, i32) {
    %c0_i32 = arith.constant 0 : i32
    %c0_i32_0 = arith.constant 0 : i32
    %c0_i32_1 = arith.constant 0 : i32
    return %c0_i32, %c0_i32_0 : i32, i32
  }
  func.func @transform_3(%arg0: i32) -> (i32, i32) {
    %c0_i32 = arith.constant 0 : i32
    %c0_i32_0 = arith.constant 0 : i32
    %c0_i32_1 = arith.constant 0 : i32
    return %c0_i32, %c0_i32_0 : i32, i32
  }
  func.func @transform_4(%arg0: i32) -> (i32, i32) {
    %c0_i32 = arith.constant 0 : i32
    %c0_i32_0 = arith.constant 0 : i32
    %c0_i32_1 = arith.constant 0 : i32
    return %c0_i32, %c0_i32_0 : i32, i32
  }
}

</mosaic_0001>

<bundles_post_ra>
// kernel: tpu_custom_call.1
= control target key start
LH: loop header
LB: loop body
LE: loop exit
PB: predicated region body
PF: predicated region fallthrough
CT: control target
= control target key end

     0   :  { %vm1138_vm0 = vcmask 523264   ;;  %s4305_s0 = inlined_call_operand.vmem [shape: bf16[132,1216], index: 0, kind: input, shape index: {}]   ;;  %s4306_s1 = inlined_call_operand.vmem [shape: bf16[1216,64], index: 1, kind: input, shape index: {}]   ;;  %s4307_s2 = inlined_call_operand.vmem [shape: f32[1,64], index: 2, kind: input, shape index: {}]   ;;  %s4308_s3 = inlined_call_operand.vmem [shape: f32[1,64], index: 3, kind: input, shape index: {}]   ;;  %s4309_s4 = inlined_call_operand.hbm [shape: f32[4,512], index: 4, kind: output, shape index: {}]  }
   0x1   :  { %v2927_v0 = vld [vmem:[%s4306_s1 + $0x40] sm:$0xff]   ;;  %v2929_v2 = vld [vmem:[%s4306_s1 + $0x48] sm:$0xff]   ;;  %v2931_v4 = vld [vmem:[%s4306_s1 + $0x50] sm:$0xff]  }
   0x2   :  { %v2928_v1 = vld [vmem:[%s4306_s1] sm:$0xff]   ;;  %2908 = vmatprep.subr.bf16.mxu1 %v2927_v0  ;;  %2628 = vmatprep.subr.bf16.mxu0 %v2927_v0  ;;  %v2930_v3 = vld [vmem:[%s4306_s1 + $0x8] sm:$0xff]   ;;  %v2932_v5 = vld [vmem:[%s4306_s1 + $0x10] sm:$0xff]  }
   0x3   :  { %2916 = vmatpush3.bf16.msra.mxu1 %v2928_v1  ;;  %2629 = vmatpush3.bf16.msra.mxu0 %v2928_v1  ;;  %v2933_v6 = vld [vmem:[%s4306_s1 + $0x58] sm:$0xff]   ;;  %v2935_v8 = vld [vmem:[%s4306_s1 + $0x60] sm:$0xff]   ;;  %v2937_v10 = vld [vmem:[%s4306_s1 + $0x68] sm:$0xff]  }
   0x4   :  { %2909 = vmatprep.subr.bf16.mxu1 %v2929_v2  ;;  %2630 = vmatprep.subr.bf16.mxu0 %v2929_v2  ;;  %v2934_v7 = vld [vmem:[%s4306_s1 + $0x18] sm:$0xff]   ;;  %v2936_v9 = vld [vmem:[%s4306_s1 + $0x20] sm:$0xff]   ;;  %v2938_v12 = vld [vmem:[%s4306_s1 + $0x28] sm:$0xff]  }
   0x5   :  { %v2945_v11 = vld [vmem:[%s4305_s0 + $0x144] ss:$40 sps:$4 sm:$0xff]   ;;  %v2939_v13 = vld [vmem:[%s4306_s1 + $0x70] sm:$0xff]   ;;  %v2941_v16 = vld [vmem:[%s4306_s1 + $0x78] sm:$0xff]  }
   0x6   :  { %1230 = vmatprep.mubr.bf16.mxu1 %v2945_v11  ;;  %v2940_v14 = vld [vmem:[%s4306_s1 + $0x30] sm:$0xff]   ;;  %v2955_v15 = vld [vmem:[%s4305_s0 + $0x4] ss:$40 sps:$4 sm:$0xff]   ;;  %v2942_v17 = vld [vmem:[%s4306_s1 + $0x38] sm:$0xff]  }
   0x7   :  { %2917 = vmatpush3.bf16.msra.mxu1 %v2930_v3  ;;  %2631 = vmatpush3.bf16.msra.mxu0 %v2930_v3  ;;  %v2946_v18 = vld [vmem:[%s4306_s1 + $0xc0] sm:$0xff]   ;;  %v2948_v22 = vld [vmem:[%s4306_s1 + $0xc8] sm:$0xff]   ;;  %v2950_v24 = vld [vmem:[%s4305_s0 + $0x194] ss:$40 sps:$4 sm:$0xff]  }
   0x8   :  { %2910 = vmatprep.subr.bf16.mxu1 %v2931_v4  ;;  %2632 = vmatprep.subr.bf16.mxu0 %v2931_v4  ;;  %v2943_v19 = vld [vmem:[%s4305_s0 + $0x140] ss:$40 sps:$4 sm:$0xff]   ;;  %v2967_v28 = vld [vmem:[%s4305_s0 + $0x54] ss:$40 sps:$4 sm:$0xff]   ;;  %v2952_v30 = vld [vmem:[%s4305_s0 + $0x190] ss:$40 sps:$4 sm:$0xff]  }
   0x9   :  { %1198 = vmatprep.mubr.bf16.mxu0 %v2955_v15  ;;  %v2957_v20 = vld [vmem:[%s4306_s1 + $0x140] sm:$0xff]   ;;  %v2960_v26 = vld [vmem:[%s4306_s1 + $0x148] sm:$0xff]   ;;  %v2956_v29 = vld [vmem:[%s4306_s1 + $0xd0] sm:$0xff]  }
   0xa   :  { %v2947_v21 = vld [vmem:[%s4306_s1 + $0x80] sm:$0xff]   ;;  %v2949_v27 = vld [vmem:[%s4306_s1 + $0x88] sm:$0xff]   ;;  %v2958_v32 = vld [vmem:[%s4306_s1 + $0x90] sm:$0xff]  }
   0xb   :  { %2918 = vmatpush3.bf16.msra.mxu1 %v2932_v5  ;;  %2633 = vmatpush3.bf16.msra.mxu0 %v2932_v5  ;;  %v2953_v23 = vld [vmem:[%s4305_s0] ss:$40 sps:$4 sm:$0xff]   ;;  %v2961_v33 = vld [vmem:[%s4305_s0 + $0x1e4] ss:$40 sps:$4 sm:$0xff]   ;;  %v2970_v34 = vld [vmem:[%s4306_s1 + $0x150] sm:$0xff]  }
   0xc   :  { %2911 = vmatprep.subr.bf16.mxu1 %v2933_v6  ;;  %2634 = vmatprep.subr.bf16.mxu0 %v2933_v6  ;;  %v2959_v25 = vld [vmem:[%s4306_s1 + $0x100] sm:$0xff]   ;;  %v2964_v31 = vld [vmem:[%s4306_s1 + $0x108] sm:$0xff]   ;;  %v2969_v35 = vld [vmem:[%s4305_s0 + $0x50] ss:$40 sps:$4 sm:$0xff]  }
   0xd   :  { %v2963_v36 = vld [vmem:[%s4306_s1 + $0xd8] sm:$0xff]   ;;  %v2971_v37 = vld [vmem:[%s4306_s1 + $0x110] sm:$0xff]   ;;  %v2979_v40 = vld [vmem:[%s4305_s0 + $0xa4] ss:$40 sps:$4 sm:$0xff]  }
   0xe   :  { %v2966_v38 = vld [vmem:[%s4306_s1 + $0x98] sm:$0xff]   ;;  %v2972_v41 = vld [vmem:[%s4306_s1 + $0xe0] sm:$0xff]   ;;  %v2981_v48 = vld [vmem:[%s4306_s1 + $0xe8] sm:$0xff]  }
   0xf   :  { %2919 = vmatpush3.bf16.msra.mxu1 %v2934_v7  ;;  %2635 = vmatpush3.bf16.msra.mxu0 %v2934_v7  ;;  %v2974_v39 = vld [vmem:[%s4306_s1 + $0x158] sm:$0xff]   ;;  %v2965_v42 = vld [vmem:[%s4305_s0 + $0x1e0] ss:$40 sps:$4 sm:$0xff]   ;;  %v2986_v52 = vld [vmem:[%s4306_s1 + $0xf0] sm:$0xff]  }
  0x10   :  { %2912 = vmatprep.subr.bf16.mxu1 %v2935_v8  ;;  %2636 = vmatprep.subr.bf16.mxu0 %v2935_v8  ;;  %v2977_v43 = vld [vmem:[%s4306_s1 + $0x118] sm:$0xff]   ;;  %v2973_v44 = vld [vmem:[%s4306_s1 + $0xa0] sm:$0xff]   ;;  %v2983_v50 = vld [vmem:[%s4306_s1 + $0xa8] sm:$0xff]   ;;  %v3193_v8 = vmov 0  }
  0x11   :  { %v2975_v45 = vld [vmem:[%s4305_s0 + $0x234] ss:$40 sps:$4 sm:$0xff]   ;;  %v2982_v46 = vld [vmem:[%s4305_s0 + $0xa0] ss:$40 sps:$4 sm:$0xff]   ;;  %v2978_v54 = vld [vmem:[%s4305_s0 + $0x230] ss:$40 sps:$4 sm:$0xff]  }
  0x12   :  { %v2984_v47 = vld [vmem:[%s4306_s1 + $0x160] sm:$0xff]   ;;  %v2987_v51 = vld [vmem:[%s4306_s1 + $0x168] sm:$0xff]   ;;  %v2992_v56 = vld [vmem:[%s4305_s0 + $0xf4] ss:$40 sps:$4 sm:$0xff]  }
  0x13   :  { %2920 = vmatpush3.bf16.msra.mxu1 %v2936_v9  ;;  %2637 = vmatpush3.bf16.msra.mxu0 %v2936_v9  ;;  %v2985_v49 = vld [vmem:[%s4306_s1 + $0x120] sm:$0xff]   ;;  %v2990_v55 = vld [vmem:[%s4306_s1 + $0x128] sm:$0xff]   ;;  %v2989_v57 = vld [vmem:[%s4306_s1 + $0xb0] sm:$0xff]  }
  0x14   :  { %2913 = vmatprep.subr.bf16.mxu1 %v2937_v10  ;;  %2638 = vmatprep.subr.bf16.mxu0 %v2937_v10  ;;  %v99_v53 = vld [vmem:[%s4305_s0 + $0x280] sm:$0x33]  ;;  %v2995_v58 = vld [vmem:[%s4306_s1 + $0x170] sm:$0xff]   ;;  %v2996_v61 = vld [vmem:[%s4306_s1 + $0xf8] sm:$0xff]  }
  0x15   :  { %v2994_v59 = vld [vmem:[%s4305_s0 + $0xf0] ss:$40 sps:$4 sm:$0xff]   ;;  %v2516_v60 = vcombine.high %v99_v53, %v99_v53  ;;  %v3004_v2 = vld [vmem:[%s4306_s1 + $0x1c0] sm:$0xff]   ;;  %v2515_v3 = vcombine.low %v99_v53, %v99_v53  ;;  %v3002_v4 = vld [vmem:[%s4305_s0 + $0xc] ss:$40 sps:$4 sm:$0xff]  }
  0x16   :  { %v2997_v62 = vld [vmem:[%s4306_s1 + $0x130] sm:$0xff]   ;;  %v2999_v63 = vld [vmem:[%s4306_s1 + $0x178] sm:$0xff]   ;;  %v3009_v7 = vld [vmem:[%s4306_s1 + $0x200] sm:$0xff]  }
  0x17   :  { %2921 = vmatpush3.bf16.msra.mxu1 %v2938_v12  ;;  %2639 = vmatpush3.bf16.msra.mxu0 %v2938_v12  ;;  %v2998_v0 = vld [vmem:[%s4306_s1 + $0xb8] sm:$0xff]   ;;  %v3013_v9 = vld [vmem:[%s4305_s0 + $0x64] ss:$40 sps:$4 sm:$0xff]   ;;  %v3000_v10 = vld [vmem:[%s4305_s0 + $0x8] ss:$40 sps:$4 sm:$0xff]  }
  0x18   :  { %2914 = vmatprep.subr.bf16.mxu1 %v2939_v13  ;;  %2640 = vmatprep.subr.bf16.mxu0 %v2939_v13  ;;  %v3003_v1 = vld [vmem:[%s4306_s1 + $0x138] sm:$0xff]   ;;  %v3018_v11 = vld [vmem:[%s4306_s1 + $0x208] sm:$0xff]   ;;  %v3008_v12 = vld [vmem:[%s4306_s1 + $0x180] sm:$0xff]  }
  0x19   :  { %v3007_v5 = vld [vmem:[%s4305_s0 + $0x14] ss:$40 sps:$4 sm:$0xff]   ;;  %v3005_v6 = vld [vmem:[%s4305_s0 + $0x10] ss:$40 sps:$4 sm:$0xff]   ;;  %v3016_v15 = vld [vmem:[%s4305_s0 + $0x60] ss:$40 sps:$4 sm:$0xff]  }
  0x1a   :  { %v3010_v13 = vld [vmem:[%s4305_s0 + $0x5c] ss:$40 sps:$4 sm:$0xff]  }
  0x1b   :  { %2922 = vmatpush3.bf16.msra.mxu1 %v2940_v14  ;;  %2641 = vmatpush3.bf16.msra.mxu0 %v2940_v14  ;;  %v3015_v14 = vld [vmem:[%s4306_s1 + $0x1c8] sm:$0xff]   ;;  %v3076_v53 = vld [vmem:[%s4306_s1 + $0x1b8] sm:$0xff]  }
  0x1c   :  { %2915 = vmatprep.subr.bf16.mxu1 %v2941_v16  ;;  %2642 = vmatprep.subr.bf16.mxu0 %v2941_v16  ;;  %v3022_v16 = vld [vmem:[%s4305_s0 + $0xb4] ss:$40 sps:$4 sm:$0xff]  }
  0x1f   :  { %2923 = vmatpush3.bf16.msra.mxu1 %v2942_v17  ;;  %2643 = vmatpush3.bf16.msra.mxu0 %v2942_v17  ;;  %v3026_v17 = vld [vmem:[%s4306_s1 + $0x210] sm:$0xff]  }
  0x20   :  { %2698 = vmatprep.subr.bf16.mxu1 %v2946_v18  ;;  %2768 = vmatprep.subr.bf16.mxu0 %v2957_v20  ;;  %v3017_v18 = vld [vmem:[%s4306_s1 + $0x188] sm:$0xff]   ;;  %v3025_v20 = vld [vmem:[%s4306_s1 + $0x1d0] sm:$0xff]  }
  0x22   :  { %1231 = vmatmul.mubr.bf16.vlgmr.msra.gmra.mrb[0].mxu1 %v2943_v19  ;;  %1199 = vmatmul.mubr.bf16.vlgmr.msra.gmra.mrb[0].mxu0 %v2953_v23  ;;  %v3012_v19 = vld [vmem:[%s4305_s0 + $0x58] ss:$40 sps:$4 sm:$0xff]  }
  0x23   :  { %2699 = vmatpush3.bf16.msra.mxu1 %v2947_v21  ;;  %1238 = vmatprep.mubr.bf16.mxu1 %v2950_v24  ;;  %v3019_v21 = vld [vmem:[%s4305_s0 + $0xac] ss:$40 sps:$4 sm:$0xff]   ;;  %v3024_v23 = vld [vmem:[%s4305_s0 + $0xb0] ss:$40 sps:$4 sm:$0xff]  }
  0x24   :  { %2700 = vmatprep.subr.bf16.mxu1 %v2948_v22  ;;  %2769 = vmatpush3.bf16.msra.mxu0 %v2959_v25  ;;  %v3031_v22 = vld [vmem:[%s4306_s1 + $0x218] sm:$0xff]   ;;  %v3027_v24 = vld [vmem:[%s4306_s1 + $0x190] sm:$0xff]  }
  0x25   :  { %2770 = vmatprep.subr.bf16.mxu0 %v2960_v26  ;;  %1206 = vmatprep.mubr.bf16.mxu0 %v2967_v28  ;;  %v3035_v25 = vld [vmem:[%s4306_s1 + $0x1d8] sm:$0xff]   ;;  %v3032_v26 = vld [vmem:[%s4305_s0 + $0x104] ss:$40 sps:$4 sm:$0xff]  }
  0x26   :  { %v3036_v28 = vld [vmem:[%s4306_s1 + $0x198] sm:$0xff]  }
  0x27   :  { %2701 = vmatpush3.bf16.msra.mxu1 %v2949_v27  ;;  %v3037_v27 = vld [vmem:[%s4306_s1 + $0x220] sm:$0xff]  }
  0x28   :  { %2702 = vmatprep.subr.bf16.mxu1 %v2956_v29  ;;  %2771 = vmatpush3.bf16.msra.mxu0 %v2964_v31  ;;  %v3021_v29 = vld [vmem:[%s4305_s0 + $0xa8] ss:$40 sps:$4 sm:$0xff]  }
  0x29   :  { %2772 = vmatprep.subr.bf16.mxu0 %v2970_v34  ;;  %v3034_v31 = vld [vmem:[%s4305_s0 + $0x100] ss:$40 sps:$4 sm:$0xff]  }
  0x2a   :  { %1239 = vmatmul.mubr.bf16.gmra.mrb[4].mxu1 %v2952_v30  ;;  %1207 = vmatmul.mubr.bf16.gmra.mrb[4].mxu0 %v2969_v35  ;;  %v3028_v30 = vld [vmem:[%s4305_s0 + $0xfc] ss:$40 sps:$4 sm:$0xff]  }
  0x2b   :  { %2703 = vmatpush3.bf16.msra.mxu1 %v2958_v32  ;;  %1246 = vmatprep.mubr.bf16.mxu1 %v2961_v33  ;;  %v3044_v32 = vld [vmem:[%s4306_s1 + $0x1e0] sm:$0xff]   ;;  %v3045_v33 = vld [vmem:[%s4306_s1 + $0x228] sm:$0xff]   ;;  %v3041_v35 = vld [vmem:[%s4305_s0 + $0x154] ss:$40 sps:$4 sm:$0xff]  }
  0x2c   :  { %2704 = vmatprep.subr.bf16.mxu1 %v2963_v36  ;;  %2773 = vmatpush3.bf16.msra.mxu0 %v2971_v37  ;;  %v3046_v34 = vld [vmem:[%s4306_s1 + $0x1a0] sm:$0xff]   ;;  %v3053_v36 = vld [vmem:[%s4306_s1 + $0x230] sm:$0xff]  }
  0x2d   :  { %2774 = vmatprep.subr.bf16.mxu0 %v2974_v39  ;;  %1214 = vmatprep.mubr.bf16.mxu0 %v2979_v40  ;;  %v3030_v37 = vld [vmem:[%s4305_s0 + $0xf8] ss:$40 sps:$4 sm:$0xff]   ;;  %v3055_v39 = vld [vmem:[%s4306_s1 + $0x1a8] sm:$0xff]  }
  0x2e   :  { %v3038_v40 = vld [vmem:[%s4305_s0 + $0x14c] ss:$40 sps:$4 sm:$0xff]  }
  0x2f   :  { %2705 = vmatpush3.bf16.msra.mxu1 %v2966_v38  ;;  %v3054_v38 = vld [vmem:[%s4306_s1 + $0x1e8] sm:$0xff]  }
  0x30   :  { %2706 = vmatprep.subr.bf16.mxu1 %v2972_v41  ;;  %2775 = vmatpush3.bf16.msra.mxu0 %v2977_v43  ;;  %v3043_v41 = vld [vmem:[%s4305_s0 + $0x150] ss:$40 sps:$4 sm:$0xff]   ;;  %v3050_v43 = vld [vmem:[%s4305_s0 + $0x1a4] ss:$40 sps:$4 sm:$0xff]  }
  0x31   :  { %2776 = vmatprep.subr.bf16.mxu0 %v2984_v47  ;;  %v3067_v47 = vld [vmem:[%s4306_s1 + $0x1b0] sm:$0xff]  }
  0x32   :  { %1247 = vmatmul.mubr.bf16.gmra.mrb[8].mxu1 %v2965_v42  ;;  %1215 = vmatmul.mubr.bf16.gmra.mrb[8].mxu0 %v2982_v46  ;;  %v3059_v42 = vld [vmem:[%s4306_s1 + $0x238] sm:$0xff]   ;;  %v3040_v46 = vld [vmem:[%s4305_s0 + $0x148] ss:$40 sps:$4 sm:$0xff]  }
  0x33   :  { %2707 = vmatpush3.bf16.msra.mxu1 %v2973_v44  ;;  %1254 = vmatprep.mubr.bf16.mxu1 %v2975_v45  ;;  %v3063_v44 = vld [vmem:[%s4306_s1 + $0x1f0] sm:$0xff]   ;;  %v3064_v45 = vld [vmem:[%s4306_s1 + $0x240] sm:$0xff]  }
  0x34   :  { %2708 = vmatprep.subr.bf16.mxu1 %v2981_v48  ;;  %2777 = vmatpush3.bf16.msra.mxu0 %v2985_v49  ;;  %v3047_v48 = vld [vmem:[%s4305_s0 + $0x19c] ss:$40 sps:$4 sm:$0xff]   ;;  %v3052_v49 = vld [vmem:[%s4305_s0 + $0x1a0] ss:$40 sps:$4 sm:$0xff]  }
  0x35   :  { %2778 = vmatprep.subr.bf16.mxu0 %v2987_v51  ;;  %1222 = vmatprep.mubr.bf16.mxu0 %v2992_v56  ;;  %v3072_v51 = vld [vmem:[%s4306_s1 + $0x248] sm:$0xff]   ;;  %v3083_v56 = vld [vmem:[%s4306_s1 + $0x258] sm:$0xff]  }
  0x37   :  { %2709 = vmatpush3.bf16.msra.mxu1 %v2983_v50  ;;  %v3060_v50 = vld [vmem:[%s4305_s0 + $0x1f4] ss:$40 sps:$4 sm:$0xff]  }
  0x38   :  { %2710 = vmatprep.subr.bf16.mxu1 %v2986_v52  ;;  %2779 = vmatpush3.bf16.msra.mxu0 %v2990_v55  ;;  %v3074_v52 = vld [vmem:[%s4306_s1 + $0x1f8] sm:$0xff]  }
  0x39   :  { %2780 = vmatprep.subr.bf16.mxu0 %v2995_v58  ;;  %v3049_v55 = vld [vmem:[%s4305_s0 + $0x198] ss:$40 sps:$4 sm:$0xff]  }
  0x3a   :  { %1255 = vmatmul.mubr.bf16.gmra.mrb[12].mxu1 %v2978_v54  ;;  %1223 = vmatmul.mubr.bf16.gmra.mrb[12].mxu0 %v2994_v59  ;;  %v3079_v54 = vld [vmem:[%s4306_s1 + $0x250] sm:$0xff]   ;;  %v3069_v59 = vld [vmem:[%s4305_s0 + $0x244] ss:$40 sps:$4 sm:$0xff]  }
  0x3b   :  { %1262 = vmatprep.mubr.bf16.mxu1 %v2516_v60  ;;  %2711 = vmatpush3.bf16.msra.mxu1 %v2989_v57  ;;  %v3056_v57 = vld [vmem:[%s4305_s0 + $0x1ec] ss:$40 sps:$4 sm:$0xff]   ;;  %v3062_v58 = vld [vmem:[%s4305_s0 + $0x1f0] ss:$40 sps:$4 sm:$0xff]  }
  0x3c   :  { %2712 = vmatprep.subr.bf16.mxu1 %v2996_v61  ;;  %2781 = vmatpush3.bf16.msra.mxu0 %v2997_v62  ;;  %v3058_v60 = vld [vmem:[%s4305_s0 + $0x1e8] ss:$40 sps:$4 sm:$0xff]   ;;  %v3065_v62 = vld [vmem:[%s4305_s0 + $0x23c] ss:$40 sps:$4 sm:$0xff]  }
  0x3d   :  { %2782 = vmatprep.subr.bf16.mxu0 %v2999_v63  ;;  %1406 = vmatprep.mubr.bf16.mxu0 %v3007_v5  ;;  %v101_v61 = vld [vmem:[%s4305_s0 + $0x290] sm:$0x33]  ;;  %v3071_v63 = vld [vmem:[%s4305_s0 + $0x240] ss:$40 sps:$4 sm:$0xff]   ;;  %v3086_v5 = vld [vmem:[%s4305_s0 + $0x24] ss:$40 sps:$4 sm:$0xff]  }
  0x3f   :  { %2713 = vmatpush3.bf16.msra.mxu1 %v2998_v0  ;;  %v2520_v0 = vcombine.high %v101_v61, %v101_v61 }
  0x40   :  { %2783 = vmatpush3.bf16.msra.mxu0 %v3003_v1  ;;  %2838 = vmatprep.subr.bf16.mxu1 %v3004_v2  ;;  %v100_v1 = vld [vmem:[%s4305_s0 + $0x288] sm:$0x33]  ;;  %v3068_v2 = vld [vmem:[%s4305_s0 + $0x238] ss:$40 sps:$4 sm:$0xff]  }
  0x41   :  { %1582 = vmatprep.subr.bf16.mxu0 %v3193_v8 }
  0x42   :  { %1263 = vmatmul.mubr.bf16.gmra.mrb[16].mxu1 %v2515_v3  ;;  %v2518_v3 = vcombine.high %v100_v1, %v100_v1 }
  0x43   :  { %1302 = vmatprep.mubr.bf16.mxu1 %v3002_v4  ;;  %1407 = vmatmul.mubr.bf16.vlgmr.msra.gmra.mrb[16].mxu0 %v3005_v6  ;;  %v2519_v4 = vcombine.low %v101_v61, %v101_v61 }
  0x44   :  { %1583 = vmatpush1.bf16.msra.mxu0 %v3009_v7  ;;  %1414 = vmatprep.mubr.bf16.mxu0 %v3013_v9 }
  0x45   :  { %1584 = vmatprep.subr.bf16.mxu0 %v3193_v8 }
  0x48   :  { %1585 = vmatpush1.bf16.msra.mxu0 %v3018_v11 }
  0x49   :  { %1586 = vmatprep.subr.bf16.mxu0 %v3193_v8 }
  0x4a   :  { %1303 = vmatmul.mubr.bf16.vlgmr.msra.gmra.mrb[20].mxu1 %v3000_v10 }
  0x4b   :  { %2839 = vmatpush3.bf16.msra.mxu1 %v3008_v12  ;;  %1310 = vmatprep.mubr.bf16.mxu1 %v3010_v13 }
  0x4c   :  { %2840 = vmatprep.subr.bf16.mxu1 %v3015_v14  ;;  %1415 = vmatmul.mubr.bf16.gmra.mrb[20].mxu0 %v3016_v15 }
  0x4d   :  { %1422 = vmatprep.mubr.bf16.mxu0 %v3022_v16  ;;  %1587 = vmatpush1.bf16.msra.mxu0 %v3026_v17 }
  0x4e   :  { %1588 = vmatprep.subr.bf16.mxu0 %v3193_v8 }
  0x4f   :  { %2841 = vmatpush3.bf16.msra.mxu1 %v3017_v18 }
  0x50   :  { %2842 = vmatprep.subr.bf16.mxu1 %v3025_v20 }
  0x51   :  { %1589 = vmatpush1.bf16.msra.mxu0 %v3031_v22 }
  0x52   :  { %1311 = vmatmul.mubr.bf16.gmra.mrb[24].mxu1 %v3012_v19  ;;  %1590 = vmatprep.subr.bf16.mxu0 %v3193_v8 }
  0x53   :  { %1318 = vmatprep.mubr.bf16.mxu1 %v3019_v21  ;;  %2843 = vmatpush3.bf16.msra.mxu1 %v3027_v24 }
  0x54   :  { %1423 = vmatmul.mubr.bf16.gmra.mrb[24].mxu0 %v3024_v23  ;;  %2844 = vmatprep.subr.bf16.mxu1 %v3035_v25 }
  0x55   :  { %1430 = vmatprep.mubr.bf16.mxu0 %v3032_v26  ;;  %1591 = vmatpush1.bf16.msra.mxu0 %v3037_v27 }
  0x56   :  { %1592 = vmatprep.subr.bf16.mxu0 %v3193_v8 }
  0x57   :  { %2845 = vmatpush3.bf16.msra.mxu1 %v3036_v28 }
  0x58   :  { %2846 = vmatprep.subr.bf16.mxu1 %v3044_v32 }
  0x59   :  { %1593 = vmatpush1.bf16.msra.mxu0 %v3045_v33 }
  0x5a   :  { %1319 = vmatmul.mubr.bf16.gmra.mrb[28].mxu1 %v3021_v29  ;;  %1594 = vmatprep.subr.bf16.mxu0 %v3193_v8 }
  0x5b   :  { %1326 = vmatprep.mubr.bf16.mxu1 %v3028_v30  ;;  %2847 = vmatpush3.bf16.msra.mxu1 %v3046_v34 }
  0x5c   :  { %1431 = vmatmul.mubr.bf16.gmra.mrb[28].mxu0 %v3034_v31  ;;  %2848 = vmatprep.subr.bf16.mxu1 %v3054_v38 }
  0x5d   :  { %1438 = vmatprep.mubr.bf16.mxu0 %v3041_v35  ;;  %1595 = vmatpush1.bf16.msra.mxu0 %v3053_v36 }
  0x5e   :  { %1596 = vmatprep.subr.bf16.mxu0 %v3193_v8 }
  0x5f   :  { %2849 = vmatpush3.bf16.msra.mxu1 %v3055_v39 }
  0x60   :  { %2850 = vmatprep.subr.bf16.mxu1 %v3063_v44 }
  0x61   :  { %1597 = vmatpush1.bf16.msra.mxu0 %v3059_v42 }
  0x62   :  { %1327 = vmatmul.mubr.bf16.gmra.mrb[32].mxu1 %v3030_v37  ;;  %1598 = vmatprep.subr.bf16.mxu0 %v3193_v8 }
  0x63   :  { %1334 = vmatprep.mubr.bf16.mxu1 %v3038_v40  ;;  %2851 = vmatpush3.bf16.msra.mxu1 %v3067_v47 }
  0x64   :  { %1439 = vmatmul.mubr.bf16.gmra.mrb[32].mxu0 %v3043_v41  ;;  %2852 = vmatprep.subr.bf16.mxu1 %v3074_v52 }
  0x65   :  { %1446 = vmatprep.mubr.bf16.mxu0 %v3050_v43  ;;  %1599 = vmatpush1.bf16.msra.mxu0 %v3064_v45 }
  0x66   :  { %1600 = vmatprep.subr.bf16.mxu0 %v3193_v8 }
  0x67   :  { %2853 = vmatpush3.bf16.msra.mxu1 %v3076_v53 }
  0x69   :  { %1601 = vmatpush1.bf16.msra.mxu0 %v3072_v51 }
  0x6a   :  { %1335 = vmatmul.mubr.bf16.gmra.mrb[36].mxu1 %v3040_v46  ;;  %1602 = vmatprep.subr.bf16.mxu0 %v3193_v8 }
  0x6b   :  { %1342 = vmatprep.mubr.bf16.mxu1 %v3047_v48 }
  0x6c   :  { %1447 = vmatmul.mubr.bf16.gmra.mrb[36].mxu0 %v3052_v49 }
  0x6d   :  { %1454 = vmatprep.mubr.bf16.mxu0 %v3060_v50  ;;  %1603 = vmatpush1.bf16.msra.mxu0 %v3079_v54 }
  0x6e   :  { %1604 = vmatprep.subr.bf16.mxu0 %v3193_v8 }
  0x71   :  { %1605 = vmatpush1.bf16.msra.mxu0 %v3083_v56 }
  0x72   :  { %1343 = vmatmul.mubr.bf16.gmra.mrb[40].mxu1 %v3049_v55 }
  0x73   :  { %1350 = vmatprep.mubr.bf16.mxu1 %v3056_v57 }
  0x74   :  { %1455 = vmatmul.mubr.bf16.gmra.mrb[40].mxu0 %v3062_v58 }
  0x75   :  { %1462 = vmatprep.mubr.bf16.mxu0 %v3069_v59 }
  0x7a   :  { %1351 = vmatmul.mubr.bf16.gmra.mrb[44].mxu1 %v3058_v60 }
  0x7b   :  { %1358 = vmatprep.mubr.bf16.mxu1 %v3065_v62 }
  0x7c   :  { %1463 = vmatmul.mubr.bf16.gmra.mrb[44].mxu0 %v3071_v63 }
  0x7d   :  { %1470 = vmatprep.mubr.bf16.mxu0 %v2520_v0 }
  0x82   :  { %1359 = vmatmul.mubr.bf16.gmra.mrb[48].mxu1 %v3068_v2 }
  0x83   :  { %1366 = vmatprep.mubr.bf16.mxu1 %v2518_v3 }
  0x84   :  { %9 = vsyncpa [#allocation3], 0  ;;  %1471 = vmatmul.mubr.bf16.gmra.mrb[48].mxu0 %v2519_v4  ;;  %v2517_v6 = vcombine.low %v100_v1, %v100_v1  ;;  %v3082_v7 = vld [vmem:[%s4305_s0 + $0x1c] ss:$40 sps:$4 sm:$0xff]   ;;  %v3084_v8 = vld [vmem:[%s4305_s0 + $0x20] ss:$40 sps:$4 sm:$0xff]  }
  0x85   :  { %2601 = vmatprep.mubr.msk.bf16.mxu0 %vm1138_vm0, %v3086_v5  ;;  %v3090_v9 = vld [vmem:[%s4305_s0 + $0x74] ss:$40 sps:$4 sm:$0xff]   ;;  %v3080_v10 = vld [vmem:[%s4305_s0 + $0x18] ss:$40 sps:$4 sm:$0xff]   ;;  %v3096_v13 = vld [vmem:[%s4305_s0 + $0xc4] ss:$40 sps:$4 sm:$0xff]  }
  0x86   :  { %v3087_v11 = vld [vmem:[%s4305_s0 + $0x6c] ss:$40 sps:$4 sm:$0xff]   ;;  %v3092_v12 = vld [vmem:[%s4305_s0 + $0x70] ss:$40 sps:$4 sm:$0xff]   ;;  %v3093_v15 = vld [vmem:[%s4305_s0 + $0xbc] ss:$40 sps:$4 sm:$0xff]  }
  0x87   :  { %v3089_v14 = vld [vmem:[%s4305_s0 + $0x68] ss:$40 sps:$4 sm:$0xff]   ;;  %v3102_v17 = vld [vmem:[%s4305_s0 + $0x114] ss:$40 sps:$4 sm:$0xff]   ;;  %v3095_v18 = vld [vmem:[%s4305_s0 + $0xb8] ss:$40 sps:$4 sm:$0xff]  }
  0x88   :  { %v3098_v16 = vld [vmem:[%s4305_s0 + $0xc0] ss:$40 sps:$4 sm:$0xff]   ;;  %v3099_v19 = vld [vmem:[%s4305_s0 + $0x10c] ss:$40 sps:$4 sm:$0xff]   ;;  %v3104_v20 = vld [vmem:[%s4305_s0 + $0x110] ss:$40 sps:$4 sm:$0xff]  }
  0x89   :  { %v3108_v21 = vld [vmem:[%s4305_s0 + $0x164] ss:$40 sps:$4 sm:$0xff]   ;;  %v3101_v22 = vld [vmem:[%s4305_s0 + $0x108] ss:$40 sps:$4 sm:$0xff]   ;;  %v3114_v25 = vld [vmem:[%s4305_s0 + $0x1b4] ss:$40 sps:$4 sm:$0xff]  }
  0x8a   :  { %1367 = vmatmul.mubr.bf16.gmra.mrb[52].mxu1 %v2517_v6  ;;  %v3105_v23 = vld [vmem:[%s4305_s0 + $0x15c] ss:$40 sps:$4 sm:$0xff]   ;;  %v3110_v24 = vld [vmem:[%s4305_s0 + $0x160] ss:$40 sps:$4 sm:$0xff]   ;;  %v3111_v27 = vld [vmem:[%s4305_s0 + $0x1ac] ss:$40 sps:$4 sm:$0xff]  }
  0x8b   :  { %1510 = vmatprep.mubr.bf16.mxu1 %v3082_v7  ;;  %v3107_v26 = vld [vmem:[%s4305_s0 + $0x158] ss:$40 sps:$4 sm:$0xff]   ;;  %v3120_v29 = vld [vmem:[%s4305_s0 + $0x204] ss:$40 sps:$4 sm:$0xff]   ;;  %v3113_v30 = vld [vmem:[%s4305_s0 + $0x1a8] ss:$40 sps:$4 sm:$0xff]  }
  0x8c   :  { %1615 = vmatmul.mubr.bf16.vlgmr.msra.gmra.mrb[52].mxu0 %v3084_v8  ;;  %v3116_v28 = vld [vmem:[%s4305_s0 + $0x1b0] ss:$40 sps:$4 sm:$0xff]   ;;  %v3117_v31 = vld [vmem:[%s4305_s0 + $0x1fc] ss:$40 sps:$4 sm:$0xff]   ;;  %v3122_v32 = vld [vmem:[%s4305_s0 + $0x200] ss:$40 sps:$4 sm:$0xff]  }
  0x8d   :  { %2602 = vmatprep.mubr.msk.bf16.mxu0 %vm1138_vm0, %v3090_v9  ;;  %v3126_v33 = vld [vmem:[%s4305_s0 + $0x254] ss:$40 sps:$4 sm:$0xff]   ;;  %v3119_v34 = vld [vmem:[%s4305_s0 + $0x1f8] ss:$40 sps:$4 sm:$0xff]   ;;  %v3125_v40 = vld [vmem:[%s4305_s0 + $0x248] ss:$40 sps:$4 sm:$0xff]  }
  0x8e   :  { %v103_v35 = vld [vmem:[%s4305_s0 + $0x2a0] sm:$0x33]  ;;  %v3123_v36 = vld [vmem:[%s4305_s0 + $0x24c] ss:$40 sps:$4 sm:$0xff]   ;;  %v3128_v37 = vld [vmem:[%s4305_s0 + $0x250] ss:$40 sps:$4 sm:$0xff]  }
  0x8f   :  { %v2524_v38 = vcombine.high %v103_v35, %v103_v35  ;;  %v102_v39 = vld [vmem:[%s4305_s0 + $0x298] sm:$0x33]  ;;  %v2523_v42 = vcombine.low %v103_v35, %v103_v35  ;;  %vm1717_vm1 = vcmask 519168   ;;  %vm2044_vm8 = vcmask 1042432  }
  0x90   :  { %v2522_v41 = vcombine.high %v102_v39, %v102_v39  ;;  %v2521_v43 = vcombine.low %v102_v39, %v102_v39  ;;  %vm2154_vm14 = vcmask 1041408  }
  0x92   :  { %1511 = vmatmul.mubr.bf16.vlgmr.msra.gmra.mrb[56].mxu1 %v3080_v10 }
  0x93   :  { %1518 = vmatprep.mubr.bf16.mxu1 %v3087_v11 }
  0x94   :  { %1623 = vmatmul.mubr.bf16.gmra.mrb[56].mxu0 %v3092_v12 }
  0x95   :  { %2603 = vmatprep.mubr.msk.bf16.mxu0 %vm1138_vm0, %v3096_v13 }
  0x9a   :  { %1519 = vmatmul.mubr.bf16.gmra.mrb[60].mxu1 %v3089_v14 }
  0x9b   :  { %1526 = vmatprep.mubr.bf16.mxu1 %v3093_v15 }
  0x9c   :  { %1631 = vmatmul.mubr.bf16.gmra.mrb[60].mxu0 %v3098_v16 }
  0x9d   :  { %2604 = vmatprep.mubr.msk.bf16.mxu0 %vm1138_vm0, %v3102_v17 }
  0xa2   :  { %1527 = vmatmul.mubr.bf16.gmra.mrb[64].mxu1 %v3095_v18 }
  0xa3   :  { %1534 = vmatprep.mubr.bf16.mxu1 %v3099_v19 }
  0xa4   :  { %1639 = vmatmul.mubr.bf16.gmra.mrb[64].mxu0 %v3104_v20 }
  0xa5   :  { %2605 = vmatprep.mubr.msk.bf16.mxu0 %vm1138_vm0, %v3108_v21 }
  0xaa   :  { %1535 = vmatmul.mubr.bf16.gmra.mrb[68].mxu1 %v3101_v22 }
  0xab   :  { %1542 = vmatprep.mubr.bf16.mxu1 %v3105_v23 }
  0xac   :  { %1647 = vmatmul.mubr.bf16.gmra.mrb[68].mxu0 %v3110_v24 }
  0xad   :  { %2606 = vmatprep.mubr.msk.bf16.mxu0 %vm1138_vm0, %v3114_v25 }
  0xb2   :  { %1543 = vmatmul.mubr.bf16.gmra.mrb[72].mxu1 %v3107_v26 }
  0xb3   :  { %1550 = vmatprep.mubr.bf16.mxu1 %v3111_v27 }
  0xb4   :  { %1655 = vmatmul.mubr.bf16.gmra.mrb[72].mxu0 %v3116_v28 }
  0xb5   :  { %2607 = vmatprep.mubr.msk.bf16.mxu0 %vm1138_vm0, %v3120_v29 }
  0xba   :  { %1551 = vmatmul.mubr.bf16.gmra.mrb[76].mxu1 %v3113_v30 }
  0xbb   :  { %1558 = vmatprep.mubr.bf16.mxu1 %v3117_v31 }
  0xbc   :  { %1663 = vmatmul.mubr.bf16.gmra.mrb[76].mxu0 %v3122_v32 }
  0xbd   :  { %2608 = vmatprep.mubr.msk.bf16.mxu0 %vm1138_vm0, %v3126_v33 }
  0xc2   :  { %1559 = vmatmul.mubr.bf16.gmra.mrb[80].mxu1 %v3119_v34 }
  0xc3   :  { %1566 = vmatprep.mubr.bf16.mxu1 %v3123_v36 }
  0xc4   :  { %1671 = vmatmul.mubr.bf16.gmra.mrb[80].mxu0 %v3128_v37 }
  0xc5   :  { %2609 = vmatprep.mubr.msk.bf16.mxu0 %vm1138_vm0, %v2524_v38 }
  0xca   :  { %1567 = vmatmul.mubr.bf16.gmra.mrb[84].mxu1 %v3125_v40 }
  0xcb   :  { %1574 = vmatprep.mubr.bf16.mxu1 %v2522_v41 }
  0xcc   :  { %1679 = vmatmul.mubr.bf16.gmra.mrb[84].mxu0 %v2523_v42 }
  0xd2   :  { %1575 = vmatmul.mubr.bf16.gmra.mrb[88].mxu1 %v2521_v43 }
  0xf5   :  { %v2668_v44 = vpop.f32.mrb[0].mxu1  ;;  %v2644_v45 = vpop.f32.mrb[0].mxu0 }
  0xf6   :  { %v2669_v46 = vpop.f32.mrb[1].mxu1  ;;  %v2645_v47 = vpop.f32.mrb[1].mxu0 }
  0xf7   :  { %v3725_v48 = vadd.f32 %v2669_v46, %v2668_v44  ;;  %v2671_v49 = vpop.f32.mrb[2].mxu1  ;;  %v2646_v50 = vadd.f32 %v2645_v47, %v2644_v45  ;;  %v2647_v51 = vpop.f32.mrb[2].mxu0 }
  0xf8   :  { %v2672_v52 = vpop.f32.mrb[3].mxu1  ;;  %v2648_v53 = vpop.f32.mrb[3].mxu0 }
  0xf9   :  { %v3727_v54 = vadd.f32 %v2672_v52, %v2671_v49  ;;  %v2649_v55 = vadd.f32 %v2648_v53, %v2647_v51 }
  0xfd   :  { %v2674_v56 = vpop.f32.mrb[4].mxu1  ;;  %v2650_v57 = vpop.f32.mrb[4].mxu0 }
  0xfe   :  { %v2675_v58 = vpop.f32.mrb[5].mxu1  ;;  %v2651_v59 = vpop.f32.mrb[5].mxu0 }
  0xff   :  { %v3729_v60 = vadd.f32 %v2675_v58, %v2674_v56  ;;  %v2677_v61 = vpop.f32.mrb[6].mxu1  ;;  %v3731_v62 = vadd.f32 %v2651_v59, %v2650_v57  ;;  %v2653_v63 = vpop.f32.mrb[6].mxu0 }
 0x100   :  { %v2678_v0 = vpop.f32.mrb[7].mxu1  ;;  %v2654_v1 = vpop.f32.mrb[7].mxu0 }
 0x101   :  { %v3733_v2 = vadd.f32 %v2678_v0, %v2677_v61  ;;  %v3735_v3 = vadd.f32 %v2654_v1, %v2653_v63 }
 0x105   :  { %v2680_v4 = vpop.f32.mrb[8].mxu1  ;;  %v2656_v5 = vpop.f32.mrb[8].mxu0 }
 0x106   :  { %v2681_v6 = vpop.f32.mrb[9].mxu1  ;;  %v2657_v7 = vpop.f32.mrb[9].mxu0 }
 0x107   :  { %v3737_v8 = vadd.f32 %v2681_v6, %v2680_v4  ;;  %v2683_v9 = vpop.f32.mrb[10].mxu1  ;;  %v3739_v10 = vadd.f32 %v2657_v7, %v2656_v5  ;;  %v2659_v11 = vpop.f32.mrb[10].mxu0 }
 0x108   :  { %v2684_v12 = vpop.f32.mrb[11].mxu1  ;;  %v2660_v13 = vpop.f32.mrb[11].mxu0 }
 0x109   :  { %v3741_v14 = vadd.f32 %v2684_v12, %v2683_v9  ;;  %v3743_v15 = vadd.f32 %v2660_v13, %v2659_v11 }
 0x10d   :  { %v2686_v16 = vpop.f32.mrb[12].mxu1  ;;  %v2662_v17 = vpop.f32.mrb[12].mxu0 }
 0x10e   :  { %v2687_v18 = vpop.f32.mrb[13].mxu1  ;;  %v2663_v19 = vpop.f32.mrb[13].mxu0 }
 0x10f   :  { %v3745_v20 = vadd.f32 %v2687_v18, %v2686_v16  ;;  %v2689_v21 = vpop.f32.mrb[14].mxu1  ;;  %v3747_v22 = vadd.f32 %v2663_v19, %v2662_v17  ;;  %v2665_v23 = vpop.f32.mrb[14].mxu0 }
 0x110   :  { %v2690_v24 = vpop.f32.mrb[15].mxu1  ;;  %v2666_v25 = vpop.f32.mrb[15].mxu0 }
 0x111   :  { %v3749_v26 = vadd.f32 %v2690_v24, %v2689_v21  ;;  %v3751_v27 = vadd.f32 %v2666_v25, %v2665_v23 }
 0x115   :  { %v2692_v28 = vpop.f32.mrb[16].mxu1 }
 0x116   :  { %v2693_v29 = vpop.f32.mrb[17].mxu1  ;;  %v2784_v30 = vpop.f32.mrb[16].mxu0 }
 0x117   :  { %v3753_v31 = vadd.f32 %v2693_v29, %v2692_v28  ;;  %v2695_v32 = vpop.f32.mrb[18].mxu1  ;;  %v2785_v33 = vpop.f32.mrb[17].mxu0 }
 0x118   :  { %v2696_v34 = vpop.f32.mrb[19].mxu1  ;;  %v2786_v35 = vadd.f32 %v2785_v33, %v2784_v30  ;;  %v2787_v36 = vpop.f32.mrb[18].mxu0 }
 0x119   :  { %v2788_v37 = vpop.f32.mrb[19].mxu0 }
 0x11a   :  { %v2789_v38 = vadd.f32 %v2788_v37, %v2787_v36 }
 0x11d   :  { %v2714_v39 = vpop.f32.mrb[20].mxu1 }
 0x11e   :  { %v2715_v40 = vpop.f32.mrb[21].mxu1 }
 0x11f   :  { %v2716_v41 = vadd.f32 %v2715_v40, %v2714_v39  ;;  %v2717_v42 = vpop.f32.mrb[22].mxu1  ;;  %v2790_v43 = vpop.f32.mrb[20].mxu0 }
 0x120   :  { %v2718_v44 = vpop.f32.mrb[23].mxu1  ;;  %v2791_v45 = vpop.f32.mrb[21].mxu0 }
 0x121   :  { %v1305_v46 = vadd.f32 %v2716_v41, %v2646_v50  ;;  %v2719_v47 = vadd.f32 %v2718_v44, %v2717_v42  ;;  %v2792_v49 = vadd.f32 %v2791_v45, %v2790_v43  ;;  %v2793_v51 = vpop.f32.mrb[22].mxu0 }
 0x122   :  { %v2794_v52 = vpop.f32.mrb[23].mxu0 }
 0x123   :  { %v1308_v53 = vadd.f32 %v2719_v47, %v2649_v55  ;;  %v3755_v56 = vadd.f32 %v2786_v35, %v1305_v46  ;;  %v2795_v57 = vadd.f32 %v2794_v52, %v2793_v51 }
 0x125   :  { %v3757_v58 = vadd.f32 %v2789_v38, %v1308_v53  ;;  %v2720_v59 = vpop.f32.mrb[24].mxu1 }
 0x126   :  { %v2721_v61 = vpop.f32.mrb[25].mxu1 }
 0x127   :  { %v2722_v63 = vadd.f32 %v2721_v61, %v2720_v59  ;;  %v2723_v0 = vpop.f32.mrb[26].mxu1  ;;  %v2796_v1 = vpop.f32.mrb[24].mxu0 }
 0x128   :  { %v2724_v4 = vpop.f32.mrb[27].mxu1  ;;  %v2797_v5 = vpop.f32.mrb[25].mxu0 }
 0x129   :  { %v1313_v6 = vadd.f32 %v2722_v63, %v3731_v62  ;;  %v2725_v50 = vadd.f32 %v2724_v4, %v2723_v0  ;;  %v2798_v7 = vadd.f32 %v2797_v5, %v2796_v1  ;;  %v2799_v9 = vpop.f32.mrb[26].mxu0 }
 0x12a   :  { %v2800_v11 = vpop.f32.mrb[27].mxu0 }
 0x12b   :  { %v1316_v55 = vadd.f32 %v2725_v50, %v3735_v3  ;;  %v3761_v12 = vadd.f32 %v2792_v49, %v1313_v6  ;;  %v2801_v13 = vadd.f32 %v2800_v11, %v2799_v9 }
 0x12d   :  { %v3763_v16 = vadd.f32 %v2795_v57, %v1316_v55  ;;  %v2726_v17 = vpop.f32.mrb[28].mxu1 }
 0x12e   :  { %v2727_v18 = vpop.f32.mrb[29].mxu1 }
 0x12f   :  { %v2728_v19 = vadd.f32 %v2727_v18, %v2726_v17  ;;  %v2729_v21 = vpop.f32.mrb[30].mxu1  ;;  %v2802_v23 = vpop.f32.mrb[28].mxu0 }
 0x130   :  { %v2730_v24 = vpop.f32.mrb[31].mxu1  ;;  %v2803_v25 = vpop.f32.mrb[29].mxu0 }
 0x131   :  { %v1321_v62 = vadd.f32 %v2728_v19, %v3739_v10  ;;  %v2731_v28 = vadd.f32 %v2730_v24, %v2729_v21  ;;  %v2804_v29 = vadd.f32 %v2803_v25, %v2802_v23  ;;  %v2805_v30 = vpop.f32.mrb[30].mxu0 }
 0x132   :  { %v2806_v32 = vpop.f32.mrb[31].mxu0 }
 0x133   :  { %v1324_v3 = vadd.f32 %v2731_v28, %v3743_v15  ;;  %v3767_v33 = vadd.f32 %v2798_v7, %v1321_v62  ;;  %v2807_v34 = vadd.f32 %v2806_v32, %v2805_v30 }
 0x135   :  { %v3769_v35 = vadd.f32 %v2801_v13, %v1324_v3  ;;  %v2732_v36 = vpop.f32.mrb[32].mxu1 }
 0x136   :  { %v2733_v37 = vpop.f32.mrb[33].mxu1 }
 0x137   :  { %v2734_v38 = vadd.f32 %v2733_v37, %v2732_v36  ;;  %v2735_v39 = vpop.f32.mrb[34].mxu1  ;;  %v2808_v40 = vpop.f32.mrb[32].mxu0 }
 0x138   :  { %v2736_v41 = vpop.f32.mrb[35].mxu1  ;;  %v2809_v42 = vpop.f32.mrb[33].mxu0 }
 0x139   :  { %v1329_v10 = vadd.f32 %v2734_v38, %v3747_v22  ;;  %v2737_v43 = vadd.f32 %v2736_v41, %v2735_v39  ;;  %v2810_v44 = vadd.f32 %v2809_v42, %v2808_v40  ;;  %v2811_v45 = vpop.f32.mrb[34].mxu0 }
 0x13a   :  { %v2812_v46 = vpop.f32.mrb[35].mxu0 }
 0x13b   :  { %v1332_v15 = vadd.f32 %v2737_v43, %v3751_v27  ;;  %v3773_v47 = vadd.f32 %v2804_v29, %v1329_v10  ;;  %v2813_v49 = vadd.f32 %v2812_v46, %v2811_v45 }
 0x13d   :  { %v3775_v51 = vadd.f32 %v2807_v34, %v1332_v15  ;;  %v2738_v52 = vpop.f32.mrb[36].mxu1 }
 0x13e   :  { %v2739_v53 = vpop.f32.mrb[37].mxu1 }
 0x13f   :  { %v2740_v57 = vadd.f32 %v2739_v53, %v2738_v52  ;;  %v2741_v59 = vpop.f32.mrb[38].mxu1  ;;  %v2814_v61 = vpop.f32.mrb[36].mxu0 }
 0x140   :  { %v2742_v63 = vpop.f32.mrb[39].mxu1  ;;  %v2815_v0 = vpop.f32.mrb[37].mxu0 }
 0x141   :  { %v1337_v22 = vadd.f32 %v2740_v57, %v3725_v48  ;;  %v2743_v1 = vadd.f32 %v2742_v63, %v2741_v59  ;;  %v2816_v4 = vadd.f32 %v2815_v0, %v2814_v61  ;;  %v2817_v5 = vpop.f32.mrb[38].mxu0 }
 0x142   :  { %v2818_v6 = vpop.f32.mrb[39].mxu0 }
 0x143   :  { %v1340_v27 = vadd.f32 %v2743_v1, %v3727_v54  ;;  %v3779_v50 = vadd.f32 %v2810_v44, %v1337_v22  ;;  %v2819_v7 = vadd.f32 %v2818_v6, %v2817_v5 }
 0x145   :  { %v3781_v9 = vadd.f32 %v2813_v49, %v1340_v27  ;;  %v2744_v11 = vpop.f32.mrb[40].mxu1 }
 0x146   :  { %v2745_v55 = vpop.f32.mrb[41].mxu1 }
 0x147   :  { %v2746_v13 = vadd.f32 %v2745_v55, %v2744_v11  ;;  %v2747_v17 = vpop.f32.mrb[42].mxu1  ;;  %v2820_v18 = vpop.f32.mrb[40].mxu0 }
 0x148   :  { %v2748_v19 = vpop.f32.mrb[43].mxu1  ;;  %v2821_v21 = vpop.f32.mrb[41].mxu0 }
 0x149   :  { %v1345_v48 = vadd.f32 %v2746_v13, %v3729_v60  ;;  %v2749_v23 = vadd.f32 %v2748_v19, %v2747_v17  ;;  %v2822_v24 = vadd.f32 %v2821_v21, %v2820_v18  ;;  %v2823_v25 = vpop.f32.mrb[42].mxu0 }
 0x14a   :  { %v2824_v62 = vpop.f32.mrb[43].mxu0 }
 0x14b   :  { %v1348_v54 = vadd.f32 %v2749_v23, %v3733_v2  ;;  %v3785_v28 = vadd.f32 %v2816_v4, %v1345_v48  ;;  %v2825_v29 = vadd.f32 %v2824_v62, %v2823_v25 }
 0x14d   :  { %v3787_v30 = vadd.f32 %v2819_v7, %v1348_v54  ;;  %v2750_v32 = vpop.f32.mrb[44].mxu1 }
 0x14e   :  { %v2751_v3 = vpop.f32.mrb[45].mxu1 }
 0x14f   :  { %v2752_v34 = vadd.f32 %v2751_v3, %v2750_v32  ;;  %v2753_v36 = vpop.f32.mrb[46].mxu1  ;;  %v2826_v37 = vpop.f32.mrb[44].mxu0 }
 0x150   :  { %v2754_v38 = vpop.f32.mrb[47].mxu1  ;;  %v2827_v39 = vpop.f32.mrb[45].mxu0 }
 0x151   :  { %v1353_v60 = vadd.f32 %v2752_v34, %v3737_v8  ;;  %v2755_v40 = vadd.f32 %v2754_v38, %v2753_v36  ;;  %v2828_v41 = vadd.f32 %v2827_v39, %v2826_v37  ;;  %v2829_v42 = vpop.f32.mrb[46].mxu0 }
 0x152   :  { %v2830_v10 = vpop.f32.mrb[47].mxu0 }
 0x153   :  { %v1356_v2 = vadd.f32 %v2755_v40, %v3741_v14  ;;  %v3791_v43 = vadd.f32 %v2822_v24, %v1353_v60  ;;  %v2831_v44 = vadd.f32 %v2830_v10, %v2829_v42 }
 0x155   :  { %v3793_v45 = vadd.f32 %v2825_v29, %v1356_v2  ;;  %v2756_v46 = vpop.f32.mrb[48].mxu1 }
 0x156   :  { %v2757_v15 = vpop.f32.mrb[49].mxu1 }
 0x157   :  { %v2758_v49 = vadd.f32 %v2757_v15, %v2756_v46  ;;  %v2759_v52 = vpop.f32.mrb[50].mxu1  ;;  %v2832_v53 = vpop.f32.mrb[48].mxu0 }
 0x158   :  { %v2760_v57 = vpop.f32.mrb[51].mxu1  ;;  %v2833_v59 = vpop.f32.mrb[49].mxu0 }
 0x159   :  { %v1361_v8 = vadd.f32 %v2758_v49, %v3745_v20  ;;  %v2761_v61 = vadd.f32 %v2760_v57, %v2759_v52  ;;  %v2834_v63 = vadd.f32 %v2833_v59, %v2832_v53  ;;  %v2835_v0 = vpop.f32.mrb[50].mxu0 }
 0x15a   :  { %v2836_v22 = vpop.f32.mrb[51].mxu0 }
 0x15b   :  { %v1364_v14 = vadd.f32 %v2761_v61, %v3749_v26  ;;  %v3797_v1 = vadd.f32 %v2828_v41, %v1361_v8 }
 0x15d   :  { %v3799_v4 = vadd.f32 %v2831_v44, %v1364_v14  ;;  %v2762_v5 = vpop.f32.mrb[52].mxu1 }
 0x15e   :  { %v2763_v6 = vpop.f32.mrb[53].mxu1 }
 0x15f   :  { %v2764_v27 = vadd.f32 %v2763_v6, %v2762_v5  ;;  %v2765_v7 = vpop.f32.mrb[54].mxu1  ;;  %v1616_v11 = vpop.f32.mrb[52].mxu0 }
 0x160   :  { %v2766_v55 = vpop.f32.mrb[55].mxu1  ;;  %v1618_v13 = vpop.f32.mrb[53].mxu0 }
 0x161   :  { %v1369_v17 = vadd.f32 %v2764_v27, %v3753_v31  ;;  %v1619_v20 = vpop.f32.mrb[54].mxu0 }
 0x162   :  { %v1621_v18 = vpop.f32.mrb[55].mxu0 }
 0x163   :  { %v3802_v19 = vadd.f32 %v2834_v63, %v1369_v17 }
 0x165   :  { %v2854_v21 = vpop.f32.mrb[56].mxu1 }
 0x166   :  { %v2855_v48 = vpop.f32.mrb[57].mxu1 }
 0x167   :  { %v2856_v26 = vadd.f32 %v2855_v48, %v2854_v21  ;;  %v2857_v23 = vpop.f32.mrb[58].mxu1  ;;  %v1624_v24 = vpop.f32.mrb[56].mxu0 }
 0x168   :  { %v2858_v25 = vpop.f32.mrb[59].mxu1  ;;  %v1626_v62 = vpop.f32.mrb[57].mxu0 }
 0x169   :  { %v2859_v54 = vadd.f32 %v2858_v25, %v2857_v23  ;;  %v1513_v29 = vadd.f32 %v2856_v26, %v3755_v56  ;;  %v1627_v32 = vpop.f32.mrb[58].mxu0 }
 0x16a   :  { %v1629_v3 = vpop.f32.mrb[59].mxu0 }
 0x16b   :  { %v3805_v34 = vadd.f32 %v1616_v11, %v1513_v29  ;;  %v1516_v31 = vadd.f32 %v2859_v54, %v3757_v58 }
 0x16d   :  { %v3808_v36 = vadd.f32 %v1619_v20, %v1516_v31  ;;  %v2860_v37 = vpop.f32.mrb[60].mxu1  ;;  %v1686_v39 = vsel %vm1138_vm0, %v3805_v34, 0.0 }
 0x16e   :  { %v2861_v38 = vpop.f32.mrb[61].mxu1 }
 0x16f   :  { %v1687_v60 = vsel %vm1138_vm0, %v3808_v36, 0.0  ;;  %v2862_v40 = vadd.f32 %v2861_v38, %v2860_v37  ;;  %v2863_v41 = vpop.f32.mrb[62].mxu1  ;;  %v1632_v42 = vpop.f32.mrb[60].mxu0 }
 0x170   :  { %v1688_v56 = vadd.f32 %v1687_v60, %v1686_v39  ;;  %v2864_v10 = vpop.f32.mrb[63].mxu1  ;;  %v1634_v2 = vpop.f32.mrb[61].mxu0 }
 0x171   :  { %v2865_v44 = vadd.f32 %v2864_v10, %v2863_v41  ;;  %v1521_v46 = vadd.f32 %v2862_v40, %v3761_v12  ;;  %v1635_v58 = vpop.f32.mrb[62].mxu0 }
 0x172   :  { %v1637_v15 = vpop.f32.mrb[63].mxu0 }
 0x173   :  { %v3815_v49 = vadd.f32 %v1624_v24, %v1521_v46  ;;  %v1524_v52 = vadd.f32 %v2865_v44, %v3763_v16 }
 0x175   :  { %v1689_v53 = vsel %vm1138_vm0, %v3815_v49, 0.0  ;;  %v3820_v57 = vadd.f32 %v1627_v32, %v1524_v52  ;;  %v2866_v59 = vpop.f32.mrb[64].mxu1 }
 0x176   :  { %v1690_v8 = vadd.f32 %v1689_v53, %v1688_v56  ;;  %v2867_v61 = vpop.f32.mrb[65].mxu1 }
 0x177   :  { %v1691_v63 = vsel %vm1138_vm0, %v3820_v57, 0.0  ;;  %v2868_v0 = vadd.f32 %v2867_v61, %v2866_v59  ;;  %v2869_v22 = vpop.f32.mrb[66].mxu1  ;;  %v1640_v12 = vpop.f32.mrb[64].mxu0 }
 0x178   :  { %v1692_v14 = vadd.f32 %v1691_v63, %v1690_v8  ;;  %v2870_v5 = vpop.f32.mrb[67].mxu1  ;;  %v1642_v6 = vpop.f32.mrb[65].mxu0 }
 0x179   :  { %v2871_v27 = vadd.f32 %v2870_v5, %v2869_v22  ;;  %v1529_v16 = vadd.f32 %v2868_v0, %v3767_v33  ;;  %v1643_v7 = vpop.f32.mrb[66].mxu0 }
 0x17a   :  { %v1645_v11 = vpop.f32.mrb[67].mxu0 }
 0x17b   :  { %v3825_v55 = vadd.f32 %v1632_v42, %v1529_v16  ;;  %v1532_v13 = vadd.f32 %v2871_v27, %v3769_v35 }
 0x17d   :  { %v1693_v17 = vsel %vm1138_vm0, %v3825_v55, 0.0  ;;  %v3830_v20 = vadd.f32 %v1635_v58, %v1532_v13  ;;  %v2872_v18 = vpop.f32.mrb[68].mxu1 }
 0x17e   :  { %v1694_v21 = vadd.f32 %v1693_v17, %v1692_v14  ;;  %v2873_v48 = vpop.f32.mrb[69].mxu1 }
 0x17f   :  { %v1695_v26 = vsel %vm1138_vm0, %v3830_v20, 0.0  ;;  %v2874_v23 = vadd.f32 %v2873_v48, %v2872_v18  ;;  %v2875_v24 = vpop.f32.mrb[70].mxu1  ;;  %v1648_v33 = vpop.f32.mrb[68].mxu0 }
 0x180   :  { %v1696_v25 = vadd.f32 %v1695_v26, %v1694_v21  ;;  %v2876_v62 = vpop.f32.mrb[71].mxu1  ;;  %v1650_v54 = vpop.f32.mrb[69].mxu0 }
 0x181   :  { %v2877_v29 = vadd.f32 %v2876_v62, %v2875_v24  ;;  %v1537_v35 = vadd.f32 %v2874_v23, %v3773_v47  ;;  %v1651_v32 = vpop.f32.mrb[70].mxu0 }
 0x182   :  { %v1653_v3 = vpop.f32.mrb[71].mxu0 }
 0x183   :  { %v3835_v31 = vadd.f32 %v1640_v12, %v1537_v35  ;;  %v1540_v37 = vadd.f32 %v2877_v29, %v3775_v51 }
 0x185   :  { %v1697_v38 = vsel %vm1138_vm0, %v3835_v31, 0.0  ;;  %v3840_v39 = vadd.f32 %v1643_v7, %v1540_v37  ;;  %v2878_v60 = vpop.f32.mrb[72].mxu1 }
 0x186   :  { %v1698_v40 = vadd.f32 %v1697_v38, %v1696_v25  ;;  %v2879_v41 = vpop.f32.mrb[73].mxu1 }
 0x187   :  { %v1699_v42 = vsel %vm1138_vm0, %v3840_v39, 0.0  ;;  %v2880_v56 = vadd.f32 %v2879_v41, %v2878_v60  ;;  %v2881_v10 = vpop.f32.mrb[74].mxu1  ;;  %v1656_v47 = vpop.f32.mrb[72].mxu0 }
 0x188   :  { %v1700_v2 = vadd.f32 %v1699_v42, %v1698_v40  ;;  %v2882_v44 = vpop.f32.mrb[75].mxu1  ;;  %v1658_v46 = vpop.f32.mrb[73].mxu0 }
 0x189   :  { %v2883_v58 = vadd.f32 %v2882_v44, %v2881_v10  ;;  %v1545_v51 = vadd.f32 %v2880_v56, %v3779_v50  ;;  %v1659_v15 = vpop.f32.mrb[74].mxu0 }
 0x18a   :  { %v1661_v52 = vpop.f32.mrb[75].mxu0 }
 0x18b   :  { %v3845_v53 = vadd.f32 %v1648_v33, %v1545_v51  ;;  %v1548_v59 = vadd.f32 %v2883_v58, %v3781_v9 }
 0x18d   :  { %v1701_v8 = vsel %vm1138_vm0, %v3845_v53, 0.0  ;;  %v3850_v61 = vadd.f32 %v1651_v32, %v1548_v59  ;;  %v2884_v63 = vpop.f32.mrb[76].mxu1 }
 0x18e   :  { %v1702_v0 = vadd.f32 %v1701_v8, %v1700_v2  ;;  %v2885_v22 = vpop.f32.mrb[77].mxu1 }
 0x18f   :  { %v1703_v12 = vsel %vm1138_vm0, %v3850_v61, 0.0  ;;  %v2886_v14 = vadd.f32 %v2885_v22, %v2884_v63  ;;  %v2887_v5 = vpop.f32.mrb[78].mxu1  ;;  %v1664_v50 = vpop.f32.mrb[76].mxu0 }
 0x190   :  { %v1704_v6 = vadd.f32 %v1703_v12, %v1702_v0  ;;  %v2888_v27 = vpop.f32.mrb[79].mxu1  ;;  %v1666_v16 = vpop.f32.mrb[77].mxu0 }
 0x191   :  { %v2889_v7 = vadd.f32 %v2888_v27, %v2887_v5  ;;  %v1553_v9 = vadd.f32 %v2886_v14, %v3785_v28  ;;  %v1667_v11 = vpop.f32.mrb[78].mxu0 }
 0x192   :  { %v1669_v13 = vpop.f32.mrb[79].mxu0 }
 0x193   :  { %v3855_v17 = vadd.f32 %v1656_v47, %v1553_v9  ;;  %v1556_v18 = vadd.f32 %v2889_v7, %v3787_v30 }
 0x195   :  { %v1705_v21 = vsel %vm1138_vm0, %v3855_v17, 0.0  ;;  %v3860_v48 = vadd.f32 %v1659_v15, %v1556_v18  ;;  %v2890_v26 = vpop.f32.mrb[80].mxu1 }
 0x196   :  { %v1706_v23 = vadd.f32 %v1705_v21, %v1704_v6  ;;  %v2891_v24 = vpop.f32.mrb[81].mxu1 }
 0x197   :  { %v1707_v33 = vsel %vm1138_vm0, %v3860_v48, 0.0  ;;  %v2892_v25 = vadd.f32 %v2891_v24, %v2890_v26  ;;  %v2893_v62 = vpop.f32.mrb[82].mxu1  ;;  %v1672_v28 = vpop.f32.mrb[80].mxu0 }
 0x198   :  { %v1708_v54 = vadd.f32 %v1707_v33, %v1706_v23  ;;  %v2894_v29 = vpop.f32.mrb[83].mxu1  ;;  %v1674_v35 = vpop.f32.mrb[81].mxu0 }
 0x199   :  { %v2895_v32 = vadd.f32 %v2894_v29, %v2893_v62  ;;  %v1561_v30 = vadd.f32 %v2892_v25, %v3791_v43  ;;  %v1675_v3 = vpop.f32.mrb[82].mxu0 }
 0x19a   :  { %v1677_v37 = vpop.f32.mrb[83].mxu0 }
 0x19b   :  { %v1665_v38 = vadd.f32 %v1664_v50, %v1561_v30  ;;  %v1564_v60 = vadd.f32 %v2895_v32, %v3793_v45 }
 0x19d   :  { %v1709_v40 = vsel %vm1138_vm0, %v1665_v38, 0.0  ;;  %v1668_v41 = vadd.f32 %v1667_v11, %v1564_v60  ;;  %v2896_v42 = vpop.f32.mrb[84].mxu1 }
 0x19e   :  { %v1710_v56 = vadd.f32 %v1709_v40, %v1708_v54  ;;  %v2897_v10 = vpop.f32.mrb[85].mxu1 }
 0x19f   :  { %v1711_v47 = vsel %vm1138_vm0, %v1668_v41, 0.0  ;;  %v2898_v2 = vadd.f32 %v2897_v10, %v2896_v42  ;;  %v2899_v44 = vpop.f32.mrb[86].mxu1  ;;  %v1680_v46 = vpop.f32.mrb[84].mxu0 }
 0x1a0   :  { %v1712_v58 = vadd.f32 %v1711_v47, %v1710_v56  ;;  %v2900_v51 = vpop.f32.mrb[87].mxu1  ;;  %v1682_v15 = vpop.f32.mrb[85].mxu0 }
 0x1a1   :  { %v2901_v43 = vadd.f32 %v2900_v51, %v2899_v44  ;;  %v1569_v52 = vadd.f32 %v2898_v2, %v3797_v1  ;;  %v1683_v59 = vpop.f32.mrb[86].mxu0 }
 0x1a2   :  { %v1684_v8 = vpop.f32.mrb[87].mxu0 }
 0x1a3   :  { %v1673_v45 = vadd.f32 %v1672_v28, %v1569_v52  ;;  %v1572_v63 = vadd.f32 %v2901_v43, %v3799_v4 }
 0x1a5   :  { %v1713_v0 = vsel %vm1138_vm0, %v1673_v45, 0.0  ;;  %v1676_v22 = vadd.f32 %v1675_v3, %v1572_v63  ;;  %v2902_v12 = vpop.f32.mrb[88].mxu1 }
 0x1a6   :  { %v1714_v14 = vadd.f32 %v1713_v0, %v1712_v58  ;;  %v2903_v5 = vpop.f32.mrb[89].mxu1 }
 0x1a7   :  { %v1715_v50 = vsel %vm1138_vm0, %v1676_v22, 0.0  ;;  %v2904_v6 = vadd.f32 %v2903_v5, %v2902_v12  ;;  %v2905_v27 = vpop.f32.mrb[90].mxu1 }
 0x1a8   :  { %v1716_v16 = vadd.f32 %v1715_v50, %v1714_v14  ;;  %v2906_v7 = vpop.f32.mrb[91].mxu1 }
 0x1a9   :  { %v1577_v9 = vadd.f32 %v2904_v6, %v3802_v19 }
 0x1ab   :  { %v1681_v1 = vadd.f32 %v1680_v46, %v1577_v9 }
 0x1ad   :  { %v1718_v11 = vsel %vm1717_vm1, %v1681_v1, 0.0 }
 0x1ae   :  { %v1719_v13 = vadd.f32 %v1718_v11, %v1716_v16 }
 0x1b0   :  { %v1720_v4 = vrot.slane %v1719_v13, 4 }
 0x1b2   :  { %v1721_v18 = vadd.f32 %v1720_v4, %v1719_v13 }
 0x1b4   :  { %v1722_v21 = vrot.slane %v1721_v18, 2 }
 0x1b6   :  { %v1723_v26 = vadd.f32 %v1722_v21, %v1721_v18 }
 0x1b8   :  { %v1724_v23 = vrot.slane %v1723_v26, 1 }
 0x1ba   :  { %v1725_v24 = vadd.f32 %v1724_v23, %v1723_v26 }
 0x1bc   :  { %v1726_v33 = vmul.f32 0.007575758, %v1725_v24 }
 0x1be   :  { %v3875_v25 = vsub.f32 %v3805_v34, %v1726_v33  ;;  %v3878_v62 = vsub.f32 %v3808_v36, %v1726_v33  ;;  %v3881_v19 = vsub.f32 %v3815_v49, %v1726_v33  ;;  %v3884_v28 = vsub.f32 %v3820_v57, %v1726_v33 }
 0x1bf   :  { %v3887_v54 = vsub.f32 %v3825_v55, %v1726_v33  ;;  %v3890_v29 = vsub.f32 %v3830_v20, %v1726_v33  ;;  %v3893_v35 = vsub.f32 %v3835_v31, %v1726_v33  ;;  %v3896_v34 = vsub.f32 %v3840_v39, %v1726_v33 }
 0x1c0   :  { %v3899_v36 = vsub.f32 %v3845_v53, %v1726_v33  ;;  %v3902_v49 = vsub.f32 %v3850_v61, %v1726_v33  ;;  %v3905_v57 = vsub.f32 %v3855_v17, %v1726_v33  ;;  %v3908_v55 = vsub.f32 %v3860_v48, %v1726_v33 }
 0x1c1   :  { %v3910_v20 = vsub.f32 %v1665_v38, %v1726_v33  ;;  %v3912_v32 = vsub.f32 %v1668_v41, %v1726_v33  ;;  %v3914_v31 = vsub.f32 %v1673_v45, %v1726_v33  ;;  %v3916_v39 = vsub.f32 %v1676_v22, %v1726_v33 }
 0x1c2   :  { %v3918_v30 = vsub.f32 %v1681_v1, %v1726_v33  ;;  %v1744_v53 = vmul.f32 %v3875_v25, %v3875_v25  ;;  %v1745_v61 = vmul.f32 %v3878_v62, %v3878_v62  ;;  %v1746_v17 = vmul.f32 %v3881_v19, %v3881_v19 }
 0x1c3   :  { %v1747_v48 = vmul.f32 %v3884_v28, %v3884_v28  ;;  %v1748_v60 = vmul.f32 %v3887_v54, %v3887_v54  ;;  %v1749_v42 = vmul.f32 %v3890_v29, %v3890_v29  ;;  %v1750_v47 = vmul.f32 %v3893_v35, %v3893_v35 }
 0x1c4   :  { %v1761_v3 = vsel %vm1138_vm0, %v1744_v53, 0.0  ;;  %v1762_v37 = vsel %vm1138_vm0, %v1745_v61, 0.0  ;;  %v1764_v40 = vsel %vm1138_vm0, %v1746_v17, 0.0  ;;  %v1751_v46 = vmul.f32 %v3896_v34, %v3896_v34 }
 0x1c5   :  { %v1763_v38 = vadd.f32 %v1762_v37, %v1761_v3  ;;  %v1766_v56 = vsel %vm1138_vm0, %v1747_v48, 0.0  ;;  %v1768_v2 = vsel %vm1138_vm0, %v1748_v60, 0.0  ;;  %v1770_v58 = vsel %vm1138_vm0, %v1749_v42, 0.0 }
 0x1c6   :  { %v1752_v15 = vmul.f32 %v3899_v36, %v3899_v36  ;;  %v1772_v43 = vsel %vm1138_vm0, %v1750_v47, 0.0  ;;  %v1753_v59 = vmul.f32 %v3902_v49, %v3902_v49  ;;  %v1774_v8 = vsel %vm1138_vm0, %v1751_v46, 0.0  ;;  %v1803_v47 = vld [vmem:[%s4307_s2] sm:$0x1]  ;;  %s3194_s2 = smov 64  }
 0x1c7   :  { %v1765_v41 = vadd.f32 %v1764_v40, %v1763_v38  ;;  %v1754_v63 = vmul.f32 %v3905_v57, %v3905_v57  ;;  %v1755_v12 = vmul.f32 %v3908_v55, %v3908_v55  ;;  %v1756_v50 = vmul.f32 %v3910_v20, %v3910_v20 }
 0x1c8   :  { %v1776_v0 = vsel %vm1138_vm0, %v1752_v15, 0.0  ;;  %v1778_v14 = vsel %vm1138_vm0, %v1753_v59, 0.0  ;;  %v1757_v16 = vmul.f32 %v3912_v32, %v3912_v32  ;;  %v1758_v1 = vmul.f32 %v3914_v31, %v3914_v31  ;;  %v3978_v15 = vld [vmem:[%s4308_s3] ss:$0 sm:$0xff]  ;;  %s3195_s3 = smov [#allocation2]  }
 0x1c9   :  { %v1767_v10 = vadd.f32 %v1766_v56, %v1765_v41  ;;  %v1780_v6 = vsel %vm1138_vm0, %v1754_v63, 0.0  ;;  %v1782_v7 = vsel %vm1138_vm0, %v1755_v12, 0.0  ;;  %v1784_v11 = vsel %vm1138_vm0, %v1756_v50, 0.0  ;;  %s2427_s24 = sshll.u32 %s3195_s3, 4  ;;  %s2428_s24 = int_to_ptr.vmem [resolvable:$true] %s2427_s24 }
 0x1ca   :  { %v1759_v4 = vmul.f32 %v3916_v39, %v3916_v39  ;;  %v1786_v18 = vsel %vm1138_vm0, %v1757_v16, 0.0  ;;  %v1760_v26 = vmul.f32 %v3918_v30, %v3918_v30  ;;  %v1788_v23 = vsel %vm1138_vm0, %v1758_v1, 0.0  ;;  %s3169_s25 = scalar_lea.vmem %s2428_s24, 256  ;;  %p3174_p1 = scmp.lt.s32.totalorder %s2428_s24, %s2428_s24 }
 0x1cb   :  { %v1769_v44 = vadd.f32 %v1768_v2, %v1767_v10  ;;  %v1805_v56 = vlaneseq  ;;  %p3170_p0 = scmp.ne.s32.totalorder %s2428_s24, %s3169_s25  ;;  %p3175_p2 = scmp.lt.s32.totalorder %s3169_s25, %s3169_s25 }
 0x1cc   :  { %v1790_v33 = vsel %vm1138_vm0, %v1759_v4, 0.0  ;;  %v1792_v61 = vsel %vm1717_vm1, %v1760_v26, 0.0 }
 0x1cd   :  { %v1771_v51 = vadd.f32 %v1770_v58, %v1769_v44  ;;  %v1806_v10 = vshrl.u32 %v1805_v56, 7  ;;  %p3176_p3 = por %p3175_p2, %p3174_p1 }
 0x1cf   :  { %v1773_v52 = vadd.f32 %v1772_v43, %v1771_v51  ;;  %v1807_v2 = vsub.s32 0, %v1806_v10  ;;  %p3177_p4 = pnand %p3176_p3, %p3170_p0 }
 0x1d1   :  { %v1775_v45 = vadd.f32 %v1774_v8, %v1773_v52 }
 0x1d3   :  { %v1777_v22 = vadd.f32 %v1776_v0, %v1775_v45 }
 0x1d5   :  { %v1779_v5 = vadd.f32 %v1778_v14, %v1777_v22 }
 0x1d7   :  { %v1781_v27 = vadd.f32 %v1780_v6, %v1779_v5 }
 0x1d9   :  { %v1783_v9 = vadd.f32 %v1782_v7, %v1781_v27 }
 0x1db   :  { %v1785_v13 = vadd.f32 %v1784_v11, %v1783_v9 }
 0x1dd   :  { %v1787_v21 = vadd.f32 %v1786_v18, %v1785_v13 }
 0x1df   :  { %v1789_v24 = vadd.f32 %v1788_v23, %v1787_v21 }
 0x1e1   :  { %v1791_v53 = vadd.f32 %v1790_v33, %v1789_v24 }
 0x1e3   :  { %v1793_v17 = vadd.f32 %v1792_v61, %v1791_v53 }
 0x1e5   :  { %v1794_v48 = vrot.slane %v1793_v17, 4 }
 0x1e7   :  { %v1795_v3 = vadd.f32 %v1794_v48, %v1793_v17 }
 0x1e9   :  { %v1796_v37 = vrot.slane %v1795_v3, 2 }
 0x1eb   :  { %v1797_v38 = vadd.f32 %v1796_v37, %v1795_v3 }
 0x1ed   :  { %v1798_v60 = vrot.slane %v1797_v38, 1 }
 0x1ef   :  { %v1799_v40 = vadd.f32 %v1798_v60, %v1797_v38 }
 0x1f1   :  { %v1800_v41 = vmul.f32 0.007575758, %v1799_v40 }
 0x1f3   :  { %v1801_v42 = vadd.f32 1e-05, %v1800_v41 }
 0x1f5   :  { %3133 = vrsqrt.f32 %v1801_v42 }
 0x1ff   :  { %v3134_v44 = vpop.eup %3133 }
 0x200   :  { %v1804_v46 = vmul.f32 %v3134_v44, %v1803_v47 }
 0x202   :  { %v1808_v58 = vrot.slane %v1804_v46, %v1807_v2 }
 0x204   :  { %v1824_v51 = vmul.f32 %v1808_v58, %v3916_v39  ;;  %v1810_v43 = vmul.f32 %v1808_v58, %v3878_v62  ;;  %v1809_v52 = vmul.f32 %v1808_v58, %v3875_v25  ;;  %v1812_v59 = vmul.f32 %v1808_v58, %v3884_v28 }
 0x205   :  { %v1811_v8 = vmul.f32 %v1808_v58, %v3881_v19  ;;  %v1815_v45 = vmul.f32 %v1808_v58, %v3893_v35  ;;  %v1816_v63 = vmul.f32 %v1808_v58, %v3896_v34  ;;  %v1825_v62 = vmul.f32 %v1808_v58, %v3918_v30 }
 0x206   :  { %v3987_v0 = vadd.f32 %v3978_v15, %v1810_v43  ;;  %v3990_v39 = vadd.f32 %v3978_v15, %v1809_v52  ;;  %v3993_v22 = vadd.f32 %v3978_v15, %v1812_v59  ;;  %v1813_v6 = vmul.f32 %v1808_v58, %v3887_v54 }
 0x207   :  { %v3997_v25 = vadd.f32 %v3978_v15, %v1811_v8  ;;  %v4000_v19 = vadd.f32 %v3978_v15, %v1815_v45  ;;  %v4003_v28 = vadd.f32 %v3978_v15, %v1816_v63  ;;  %v4010_v5 = vadd.f32 %v3978_v15, %v1825_v62 }
 0x208   :  { %v1869_v35 = vmul.f32 1.442695, %v3987_v0  ;;  %v1867_v34 = vmul.f32 1.442695, %v3990_v39  ;;  %v1873_v12 = vmul.f32 1.442695, %v3993_v22  ;;  %v1814_v27 = vmul.f32 %v1808_v58, %v3890_v29 }
 0x209   :  { %v1871_v14 = vmul.f32 1.442695, %v3997_v25  ;;  %v1879_v30 = vmul.f32 1.442695, %v4000_v19  ;;  %v1881_v50 = vmul.f32 1.442695, %v4003_v28  ;;  %v1817_v16 = vmul.f32 %v1808_v58, %v3899_v36 }
 0x20a   :  { %3135 = vpow2.f32 %v1869_v35  ;;  %v1818_v7 = vmul.f32 %v1808_v58, %v3902_v49  ;;  %v1819_v9 = vmul.f32 %v1808_v58, %v3905_v57  ;;  %v1820_v1 = vmul.f32 %v1808_v58, %v3908_v55 }
 0x20b   :  { %3137 = vpow2.f32 %v1867_v34  ;;  %v4021_v11 = vadd.f32 %v3978_v15, %v1813_v6  ;;  %v4024_v13 = vadd.f32 %v3978_v15, %v1814_v27  ;;  %v4027_v54 = vadd.f32 %v3978_v15, %v1817_v16 }
 0x20c   :  { %3139 = vpow2.f32 %v1873_v12  ;;  %v1821_v29 = vmul.f32 %v1808_v58, %v3910_v20  ;;  %v4031_v36 = vadd.f32 %v3978_v15, %v1824_v51  ;;  %v4035_v57 = vadd.f32 %v3978_v15, %v1818_v7 }
 0x20d   :  { %3141 = vpow2.f32 %v1871_v14  ;;  %v1875_v49 = vmul.f32 1.442695, %v4021_v11  ;;  %v1899_v55 = vmul.f32 1.442695, %v4010_v5  ;;  %v1877_v4 = vmul.f32 1.442695, %v4024_v13 }
 0x20e   :  { %3143 = vpow2.f32 %v1879_v30  ;;  %v1883_v18 = vmul.f32 1.442695, %v4027_v54  ;;  %v4041_v21 = vadd.f32 %v3978_v15, %v1819_v9  ;;  %v1822_v20 = vmul.f32 %v1808_v58, %v3912_v32 }
 0x20f   :  { %3145 = vpow2.f32 %v1881_v50  ;;  %v4045_v26 = vadd.f32 %v3978_v15, %v1820_v1  ;;  %v1823_v23 = vmul.f32 %v1808_v58, %v3914_v31  ;;  %v4049_v24 = vadd.f32 %v3978_v15, %v1821_v29 }
 0x210   :  { %3147 = vpow2.f32 %v1875_v49  ;;  %v4052_v33 = vmul.f32 1.442695, %v4031_v36  ;;  %vm1851_vm2 = vcmp.gt.f32.partialorder %v3987_v0, 0.0  ;;  %v1885_v53 = vmul.f32 1.442695, %v4035_v57 }
 0x211   :  { %3149 = vpow2.f32 %v1877_v4  ;;  %vm1850_vm3 = vcmp.gt.f32.partialorder %v3990_v39, 0.0  ;;  %vm1853_vm4 = vcmp.gt.f32.partialorder %v3993_v22, 0.0  ;;  %v1887_v32 = vmul.f32 1.442695, %v4041_v21 }
 0x212   :  { %3151 = vpow2.f32 %v1883_v18  ;;  %vm1852_vm5 = vcmp.gt.f32.partialorder %v3997_v25, 0.0  ;;  %v1889_v48 = vmul.f32 1.442695, %v4045_v26  ;;  %v4062_v3 = vadd.f32 %v3978_v15, %v1822_v20 }
 0x213   :  { %3153 = vpow2.f32 %v1899_v55  ;;  %vm1856_vm6 = vcmp.gt.f32.partialorder %v4000_v19, 0.0  ;;  %vm1857_vm7 = vcmp.gt.f32.partialorder %v4003_v28, 0.0  ;;  %v1891_v60 = vmul.f32 1.442695, %v4049_v24 }
 0x214   :  { %v3136_v61 = vpop.eup %3135  ;;  %vm1854_vm9 = vcmp.gt.f32.partialorder %v4021_v11, 0.0  ;;  %3155 = vpow2.f32 %v1885_v53  ;;  %v4074_v56 = vadd.f32 %v3978_v15, %v1823_v23  ;;  %vm1855_vm10 = vcmp.gt.f32.partialorder %v4024_v13, 0.0 }
 0x215   :  { %v3138_v31 = vpop.eup %3137  ;;  %v2612_v17 = vadd.f32 -1.0, %v3136_v61  ;;  %3157 = vpow2.f32 %v1887_v32  ;;  %v4090_v15 = vmul.f32 1.442695, %v4062_v3  ;;  %vm1858_vm11 = vcmp.gt.f32.partialorder %v4027_v54, 0.0 }
 0x216   :  { %v3140_v37 = vpop.eup %3139  ;;  %v2611_v38 = vadd.f32 -1.0, %v3138_v31  ;;  %3159 = vpow2.f32 %v1889_v48  ;;  %vm1859_vm12 = vcmp.gt.f32.partialorder %v4035_v57, 0.0  ;;  %vm1860_vm13 = vcmp.gt.f32.partialorder %v4041_v21, 0.0 }
 0x217   :  { %v3142_v40 = vpop.eup %3141  ;;  %v4070_v41 = vsel %vm1851_vm2, %v3987_v0, %v2612_v17  ;;  %v2614_v42 = vadd.f32 -1.0, %v3140_v37  ;;  %3161 = vpow2.f32 %v1891_v60  ;;  %vm1861_vm15 = vcmp.gt.f32.partialorder %v4045_v26, 0.0 }
 0x218   :  { %v3144_v10 = vpop.eup %3143  ;;  %v1964_v47 = vrot.slane %v4070_v41, 4  ;;  %v4080_v2 = vsel %vm1850_vm3, %v3990_v39, %v2611_v38  ;;  %v2613_v44 = vadd.f32 -1.0, %v3142_v40  ;;  %vm1862_vm2 = vcmp.gt.f32.partialorder %v4049_v24, 0.0 }
 0x219   :  { %v3146_v46 = vpop.eup %3145  ;;  %v1945_v58 = vrot.slane %v4080_v2, 4  ;;  %v4087_v51 = vsel %vm1853_vm4, %v3993_v22, %v2614_v42  ;;  %v2617_v39 = vadd.f32 -1.0, %v3144_v10  ;;  %3163 = vpow2.f32 %v4090_v15 }
 0x21a   :  { %v1966_v43 = vsel %vm1717_vm1, %v1964_v47, 0.0  ;;  %v2002_v52 = vrot.slane %v4087_v51, 4  ;;  %v4097_v59 = vsel %vm1852_vm5, %v3997_v25, %v2613_v44  ;;  %v3148_v8 = vpop.eup %3147  ;;  %v2618_v34 = vadd.f32 -1.0, %v3146_v46 }
 0x21b   :  { %v1967_v45 = vrot.slane %v1966_v43, 4  ;;  %v1947_v63 = vsel %vm1717_vm1, %v1945_v58, 0.0  ;;  %v1983_v0 = vrot.slane %v4097_v59, 4  ;;  %v3150_v22 = vpop.eup %3149  ;;  %v2615_v12 = vadd.f32 -1.0, %v3148_v8 }
 0x21c   :  { %v1948_v62 = vrot.slane %v1947_v63, 4  ;;  %v2004_v35 = vsel %vm1717_vm1, %v2002_v52, 0.0  ;;  %v3152_v14 = vpop.eup %3151  ;;  %v4107_v6 = vsel %vm1856_vm6, %v4000_v19, %v2617_v39  ;;  %v4114_v9 = vsel %vm1857_vm7, %v4003_v28, %v2618_v34 }
 0x21d   :  { %v1968_v30 = vadd.f32 %v1967_v45, %v1966_v43  ;;  %v2005_v25 = vrot.slane %v2004_v35, 4  ;;  %v1985_v50 = vsel %vm1717_vm1, %v1983_v0, 0.0  ;;  %v4109_v27 = vpop.eup %3153  ;;  %v2068_v1 = vrot.slane %v4107_v6, 5 }
 0x21e   :  { %v1949_v16 = vadd.f32 %v1948_v62, %v1947_v63  ;;  %v1986_v7 = vrot.slane %v1985_v50, 4  ;;  %v2090_v55 = vrot.slane %v4114_v9, 5  ;;  %v2616_v4 = vadd.f32 -1.0, %v3150_v22  ;;  %v3156_v53 = vpop.eup %3155 }
 0x21f   :  { %v1969_v29 = vrot.slane %v1968_v30, 2  ;;  %v2006_v49 = vadd.f32 %v2005_v25, %v2004_v35  ;;  %v4121_v19 = vsel %vm1854_vm9, %v4021_v11, %v2615_v12  ;;  %v2619_v23 = vadd.f32 -1.0, %v3152_v14  ;;  %v3158_v17 = vpop.eup %3157 }
 0x220   :  { %v1950_v18 = vrot.slane %v1949_v16, 2  ;;  %v1987_v20 = vadd.f32 %v1986_v7, %v1985_v50  ;;  %v2091_v28 = vsel %vm2044_vm8, %v2068_v1, %v2090_v55  ;;  %v4127_v31 = vsel %vm1855_vm10, %v4024_v13, %v2616_v4  ;;  %v3160_v11 = vpop.eup %3159 }
 0x221   :  { %v1970_v61 = vadd.f32 %v1969_v29, %v1968_v30  ;;  %v2007_v32 = vrot.slane %v2006_v49, 2  ;;  %v2093_v38 = vsel %vm1717_vm1, %v2091_v28, 0.0  ;;  %v2045_v60 = vrot.slane %v4121_v19, 5  ;;  %v3162_v13 = vpop.eup %3161 }
 0x222   :  { %v1951_v48 = vadd.f32 %v1950_v18, %v1949_v16  ;;  %v1988_v37 = vrot.slane %v1987_v20, 2  ;;  %v2094_v10 = vrot.slane %v2093_v38, 4  ;;  %v2046_v47 = vrot.slane %v4127_v31, 5 }
 0x223   :  { %v1971_v40 = vrot.slane %v1970_v61, 1  ;;  %v2008_v42 = vadd.f32 %v2007_v32, %v2006_v49  ;;  %v4137_v58 = vsel %vm1858_vm11, %v4027_v54, %v2619_v23  ;;  %v2620_v43 = vadd.f32 -1.0, %v3156_v53 }
 0x224   :  { %v1952_v44 = vrot.slane %v1951_v48, 1  ;;  %v1989_v46 = vadd.f32 %v1988_v37, %v1987_v20  ;;  %v2095_v45 = vadd.f32 %v2094_v10, %v2093_v38  ;;  %v2047_v63 = vsel %vm2044_vm8, %v2045_v60, %v2046_v47 }
 0x225   :  { %v1972_v52 = vadd.f32 %v1971_v40, %v1970_v61  ;;  %v2009_v8 = vrot.slane %v2008_v42, 1  ;;  %v2049_v22 = vsel %vm1717_vm1, %v2047_v63, 0.0  ;;  %v2112_v62 = vrot.slane %v4137_v58, 5 }
 0x226   :  { %v1953_v0 = vadd.f32 %v1952_v44, %v1951_v48  ;;  %v1990_v39 = vrot.slane %v1989_v46, 1  ;;  %v2096_v12 = vrot.slane %v2095_v45, 2  ;;  %v2050_v14 = vrot.slane %v2049_v22, 4 }
 0x227   :  { %v1973_v35 = vmul.f32 0.25, %v1972_v52  ;;  %v2010_v34 = vadd.f32 %v2009_v8, %v2008_v42  ;;  %v2113_v25 = vsel %vm2044_vm8, %v2090_v55, %v2112_v62  ;;  %v2069_v50 = vsel %vm2044_vm8, %v2046_v47, %v2068_v1 }
 0x228   :  { %v1954_v54 = vmul.f32 0.25, %v1953_v0  ;;  %v1991_v30 = vadd.f32 %v1990_v39, %v1989_v46  ;;  %v2097_v7 = vadd.f32 %v2096_v12, %v2095_v45  ;;  %v2051_v29 = vadd.f32 %v2050_v14, %v2049_v22 }
 0x229   :  { %2017 = vrot.lane.b32.xlu1 %v1973_v35, %s3194_s2  ;;  %v2011_v16 = vmul.f32 0.25, %v2010_v34  ;;  %v2115_v49 = vsel %vm1717_vm1, %v2113_v25, 0.0  ;;  %v2071_v20 = vsel %vm1717_vm1, %v2069_v50, 0.0  ;;  %v2621_v23 = vadd.f32 -1.0, %v3158_v17 }
 0x22a   :  { %2013 = vrot.lane.b32.xlu0 %v1954_v54, %s3194_s2  ;;  %v1992_v4 = vmul.f32 0.25, %v1991_v30  ;;  %v2116_v18 = vrot.slane %v2115_v49, 4  ;;  %v2098_v55 = vrot.slane %v2097_v7, 1  ;;  %v2052_v53 = vrot.slane %v2051_v29, 2 }
 0x22b   :  { %v2072_v1 = vrot.slane %v2071_v20, 4  ;;  %v4153_v61 = vsel %vm1859_vm12, %v4035_v57, %v2620_v43  ;;  %v4158_v28 = vsel %vm1860_vm13, %v4041_v21, %v2621_v23  ;;  %v2155_v37 = vrot.slane %v4137_v58, 6 }
 0x22c   :  { %v2117_v32 = vadd.f32 %v2116_v18, %v2115_v49  ;;  %v2156_v48 = vrot.slane %v4153_v61, 6  ;;  %v2099_v17 = vadd.f32 %v2098_v55, %v2097_v7  ;;  %v2053_v38 = vadd.f32 %v2052_v53, %v2051_v29 }
 0x22d   :  { %2025 = vrot.lane.b32.xlu1 %v2011_v16, %s3194_s2  ;;  %v2073_v60 = vadd.f32 %v2072_v1, %v2071_v20  ;;  %v2178_v40 = vrot.slane %v4158_v28, 6  ;;  %v2622_v10 = vadd.f32 -1.0, %v3160_v11  ;;  %v2623_v47 = vadd.f32 -1.0, %v3162_v13 }
 0x22e   :  { %2021 = vrot.lane.b32.xlu0 %v1992_v4, %s3194_s2  ;;  %v2118_v57 = vrot.slane %v2117_v32, 2  ;;  %v2157_v42 = vsel %vm2154_vm14, %v2155_v37, %v2156_v48  ;;  %v2100_v21 = vmul.f32 0.25, %v2099_v17  ;;  %v2054_v44 = vrot.slane %v2053_v38, 1 }
 0x22f   :  { %v2074_v46 = vrot.slane %v2073_v60, 2  ;;  %v2179_v43 = vsel %vm2154_vm14, %v2156_v48, %v2178_v40  ;;  %v2159_v45 = vsel %vm1717_vm1, %v2157_v42, 0.0  ;;  %v4172_v63 = vsel %vm1861_vm15, %v4045_v26, %v2622_v10 }
 0x230   :  { %v2119_v52 = vadd.f32 %v2118_v57, %v2117_v32  ;;  %v2181_v8 = vsel %vm1717_vm1, %v2179_v43, 0.0  ;;  %v2055_v0 = vadd.f32 %v2054_v44, %v2053_v38  ;;  %v2160_v39 = vrot.slane %v2159_v45, 4 }
 0x231   :  { %2132 = vrot.lane.b32.xlu1 %v2100_v21, %s3194_s2  ;;  %v2075_v11 = vadd.f32 %v2074_v46, %v2073_v60  ;;  %v2182_v13 = vrot.slane %v2181_v8, 4  ;;  %v4178_v62 = vsel %vm1862_vm2, %v4049_v24, %v2623_v47  ;;  %v2200_v35 = vrot.slane %v4172_v63, 6 }
 0x232   :  { %v2120_v22 = vrot.slane %v2119_v52, 1  ;;  %v2056_v34 = vmul.f32 0.25, %v2055_v0  ;;  %v2161_v14 = vadd.f32 %v2160_v39, %v2159_v45  ;;  %v2222_v30 = vrot.slane %v4178_v62, 6 }
 0x233   :  { %v2076_v12 = vrot.slane %v2075_v11, 1  ;;  %v2183_v26 = vadd.f32 %v2182_v13, %v2181_v8  ;;  %v2201_v25 = vsel %vm2154_vm14, %v2178_v40, %v2200_v35  ;;  %v1895_v50 = vmul.f32 1.442695, %v4074_v56  ;;  %v3164_v40 = vpop.eup %3163 }
 0x234   :  { %v2121_v54 = vadd.f32 %v2120_v22, %v2119_v52  ;;  %2124 = vrot.lane.b32.xlu0 %v2056_v34, %s3194_s2  ;;  %v2162_v7 = vrot.slane %v2161_v14, 2  ;;  %v2203_v29 = vsel %vm1717_vm1, %v2201_v25, 0.0  ;;  %v2223_v15 = vsel %vm2154_vm14, %v2200_v35, %v2222_v30 }
 0x235   :  { %v2077_v16 = vadd.f32 %v2076_v12, %v2075_v11  ;;  %v2184_v24 = vrot.slane %v2183_v26, 2  ;;  %v2204_v4 = vrot.slane %v2203_v29, 4  ;;  %3165 = vpow2.f32 %v1895_v50 }
 0x236   :  { %v2122_v49 = vmul.f32 0.25, %v2121_v54  ;;  %v2163_v23 = vadd.f32 %v2162_v7, %v2161_v14  ;;  %v2225_v55 = vsel %vm1717_vm1, %v2223_v15, 0.0  ;;  %3167 = vpow2.f32 %v4052_v33 }
 0x237   :  { %v2078_v18 = vmul.f32 0.25, %v2077_v16  ;;  %v2185_v20 = vadd.f32 %v2184_v24, %v2183_v26  ;;  %v2226_v53 = vrot.slane %v2225_v55, 4  ;;  %v2205_v1 = vadd.f32 %v2204_v4, %v2203_v29 }
 0x238   :  { %2136 = vrot.lane.b32.xlu1 %v2122_v49, %s3194_s2  ;;  %v2164_v48 = vrot.slane %v2163_v23, 1  ;;  %v2627_v10 = vadd.f32 -1.0, %v4109_v27  ;;  %v2624_v44 = vadd.f32 -1.0, %v3164_v40  ;;  %vm1863_vm3 = vcmp.gt.f32.partialorder %v4062_v3, 0.0 }
 0x239   :  { %2128 = vrot.lane.b32.xlu0 %v2078_v18, %s3194_s2  ;;  %v2186_v32 = vrot.slane %v2185_v20, 1  ;;  %v2227_v37 = vadd.f32 %v2226_v53, %v2225_v55  ;;  %v2206_v17 = vrot.slane %v2205_v1, 2  ;;  %v2265_v33 = vrot.slane %v4178_v62, 7 }
 0x23a   :  { %v2165_v60 = vadd.f32 %v2164_v48, %v2163_v23  ;;  %v4198_v52 = vsel %vm1863_vm3, %v4062_v3, %v2624_v44  ;;  %vm2264_vm4 = vcmask 1040384   ;;  %vm1866_vm5 = vcmp.gt.f32.partialorder %v4010_v5, 0.0 }
 0x23b   :  { %v2187_v38 = vadd.f32 %v2186_v32, %v2185_v20  ;;  %v2228_v57 = vrot.slane %v2227_v37, 2  ;;  %v2207_v42 = vadd.f32 %v2206_v17, %v2205_v1  ;;  %v2266_v0 = vrot.slane %v4198_v52, 7 }
 0x23c   :  { %v2166_v21 = vmul.f32 0.25, %v2165_v60  ;;  %v1934_v11 = vsel %vm1866_vm5, %v4010_v5, %v2627_v10  ;;  %vm1864_vm6 = vcmp.gt.f32.partialorder %v4074_v56, 0.0  ;;  %vm1865_vm7 = vcmp.gt.f32.partialorder %v4031_v36, 0.0 }
 0x23d   :  { %v2188_v47 = vmul.f32 0.25, %v2187_v38  ;;  %v2229_v46 = vadd.f32 %v2228_v57, %v2227_v37  ;;  %v2208_v43 = vrot.slane %v2207_v42, 1  ;;  %v2267_v34 = vsel %vm2264_vm4, %v2265_v33, %v2266_v0 }
 0x23e   :  { %2234 = vrot.lane.b32.xlu0 %v2166_v21, %s3194_s2  ;;  %v2269_v12 = vsel %vm1717_vm1, %v2267_v34, 0.0  ;;  %v2332_v14 = vrot.slane %v1934_v11, 7  ;;  %v2033_v11 = vrot.slane %v4121_v19, 1 }
 0x23f   :  { %2238 = vrot.lane.b32.xlu1 %v2188_v47, %s3194_s2  ;;  %v3166_v8 = vpop.eup %3165  ;;  %v2230_v27 = vrot.slane %v2229_v46, 1  ;;  %v2209_v45 = vadd.f32 %v2208_v43, %v2207_v42  ;;  %v2270_v30 = vrot.slane %v2269_v12, 4 }
 0x240   :  { %v2625_v13 = vadd.f32 -1.0, %v3166_v8  ;;  %v3168_v39 = vpop.eup %3167  ;;  %v2035_v34 = vsel %vm1717_vm1, %v2033_v11, 0.0 }
 0x241   :  { %v2231_v22 = vadd.f32 %v2230_v27, %v2229_v46  ;;  %v2210_v35 = vmul.f32 0.25, %v2209_v45  ;;  %v2626_v26 = vadd.f32 -1.0, %v3168_v39  ;;  %v2271_v50 = vadd.f32 %v2270_v30, %v2269_v12 }
 0x242   :  { %v4206_v3 = vsel %vm1864_vm6, %v4074_v56, %v2625_v13  ;;  %v2079_v45 = vrot.slane %v4107_v6, 1  ;;  %v1974_v13 = vsel %vm1717_vm1, %v4097_v59, 0.0  ;;  %v1955_v39 = vsel %vm1717_vm1, %v4070_v41, 0.0 }
 0x243   :  { %v2232_v54 = vmul.f32 0.25, %v2231_v22  ;;  %2242 = vrot.lane.b32.xlu0 %v2210_v35, %s3194_s2  ;;  %v2288_v5 = vrot.slane %v4206_v3, 7  ;;  %v4213_v25 = vsel %vm1865_vm7, %v4031_v36, %v2626_v26  ;;  %v2272_v29 = vrot.slane %v2271_v50, 2 }
 0x244   :  { %v2310_v16 = vrot.slane %v4213_v25, 7  ;;  %v2101_v35 = vrot.slane %v4114_v9, 1  ;;  %v2057_v12 = vrot.slane %v4127_v31, 1  ;;  %v1935_v6 = vsel %vm1717_vm1, %v4080_v2, 0.0 }
 0x245   :  { %2246 = vrot.lane.b32.xlu1 %v2232_v54, %s3194_s2  ;;  %v2289_v56 = vsel %vm2264_vm4, %v2266_v0, %v2288_v5  ;;  %v2273_v20 = vadd.f32 %v2272_v29, %v2271_v50  ;;  %v2081_v0 = vsel %vm1717_vm1, %v2079_v45, 0.0  ;;  %v1993_v26 = vsel %vm1717_vm1, %v4087_v51, 0.0 }
 0x246   :  { %v2291_v24 = vsel %vm1717_vm1, %v2289_v56, 0.0  ;;  %v2333_v49 = vsel %vm2264_vm4, %v2310_v16, %v2332_v14  ;;  %v2311_v15 = vsel %vm2264_vm4, %v2288_v5, %v2310_v16  ;;  %v2082_v22 = vrot.slane %v2081_v0, 4 }
 0x247   :  { %v2292_v7 = vrot.slane %v2291_v24, 4  ;;  %v2335_v4 = vsel %vm1717_vm1, %v2333_v49, 0.0  ;;  %v2313_v36 = vsel %vm1717_vm1, %v2311_v15, 0.0  ;;  %v2274_v1 = vrot.slane %v2273_v20, 1 }
 0x248   :  { %v2336_v23 = vrot.slane %v2335_v4, 4  ;;  %v2314_v55 = vrot.slane %v2313_v36, 4  ;;  %v1975_v19 = vrot.slane %v1974_v13, 4  ;;  %v1956_v14 = vrot.slane %v1955_v39, 4 }
 0x249   :  { %v2293_v18 = vadd.f32 %v2292_v7, %v2291_v24  ;;  %v2275_v17 = vadd.f32 %v2274_v1, %v2273_v20  ;;  %v2083_v54 = vadd.f32 %v2082_v22, %v2081_v0  ;;  %v2036_v59 = vrot.slane %v2035_v34, 4 }
 0x24a   :  { %v2337_v32 = vadd.f32 %v2336_v23, %v2335_v4  ;;  %v2315_v48 = vadd.f32 %v2314_v55, %v2313_v36  ;;  %v2103_v5 = vsel %vm1717_vm1, %v2101_v35, 0.0  ;;  %v1936_v41 = vrot.slane %v1935_v6, 4 }
 0x24b   :  { %v2294_v53 = vrot.slane %v2293_v18, 2  ;;  %v2276_v57 = vmul.f32 0.25, %v2275_v17  ;;  %v1994_v30 = vrot.slane %v1993_v26, 4  ;;  %v2059_v9 = vsel %vm1717_vm1, %v2057_v12, 0.0 }
 0x24c   :  { %v2338_v38 = vrot.slane %v2337_v32, 2  ;;  %v2316_v60 = vrot.slane %v2315_v48, 2  ;;  %v1976_v56 = vadd.f32 %v1975_v19, %v1974_v13  ;;  %v1957_v50 = vadd.f32 %v1956_v14, %v1955_v39 }
 0x24d   :  { %v2295_v37 = vadd.f32 %v2294_v53, %v2293_v18  ;;  %2344 = vrot.lane.b32.xlu0 %v2276_v57, %s3194_s2  ;;  %v2104_v16 = vrot.slane %v2103_v5, 4  ;;  %v2167_v31 = vrot.slane %v4153_v61, 2  ;;  %v2143_v2 = vrot.slane %v4137_v58, 2 }
 0x24e   :  { %v2339_v42 = vadd.f32 %v2338_v38, %v2337_v32  ;;  %v2317_v10 = vadd.f32 %v2316_v60, %v2315_v48  ;;  %v2084_v24 = vrot.slane %v2083_v54, 2  ;;  %v2037_v7 = vadd.f32 %v2036_v59, %v2035_v34 }
 0x24f   :  { %v2296_v40 = vrot.slane %v2295_v37, 1  ;;  %v2060_v51 = vrot.slane %v2059_v9, 4  ;;  %v1937_v29 = vadd.f32 %v1936_v41, %v1935_v6  ;;  %v1995_v49 = vadd.f32 %v1994_v30, %v1993_v26 }
 0x250   :  { %v2340_v21 = vrot.slane %v2339_v42, 1  ;;  %v2318_v44 = vrot.slane %v2317_v10, 1  ;;  %v1977_v15 = vrot.slane %v1976_v56, 2  ;;  %v1958_v4 = vrot.slane %v1957_v50, 2 }
 0x251   :  { %v2297_v47 = vadd.f32 %v2296_v40, %v2295_v37  ;;  %v2105_v36 = vadd.f32 %v2104_v16, %v2103_v5  ;;  %v2169_v18 = vsel %vm1717_vm1, %v2167_v31, 0.0  ;;  %v2145_v20 = vsel %vm1717_vm1, %v2143_v2, 0.0 }
 0x252   :  { %v2341_v43 = vadd.f32 %v2340_v21, %v2339_v42  ;;  %v2319_v33 = vadd.f32 %v2318_v44, %v2317_v10  ;;  %v2085_v23 = vadd.f32 %v2084_v24, %v2083_v54  ;;  %v2038_v55 = vrot.slane %v2037_v7, 2 }
 0x253   :  { %v2298_v46 = vmul.f32 0.25, %v2297_v47  ;;  %v2061_v53 = vadd.f32 %v2060_v51, %v2059_v9  ;;  %v2189_v1 = vrot.slane %v4158_v28, 2  ;;  %v1938_v61 = vrot.slane %v1937_v29, 2 }
 0x254   :  { %v2320_v8 = vmul.f32 0.25, %v2319_v33  ;;  %v2342_v27 = vmul.f32 0.25, %v2341_v43  ;;  %v1996_v32 = vrot.slane %v1995_v49, 2  ;;  %v1978_v58 = vadd.f32 %v1977_v15, %v1976_v56 }
 0x255   :  { %2348 = vrot.lane.b32.xlu1 %v2298_v46, %s3194_s2  ;;  %v2170_v48 = vrot.slane %v2169_v18, 4  ;;  %v2146_v37 = vrot.slane %v2145_v20, 4  ;;  %v2211_v17 = vrot.slane %v4172_v63, 2  ;;  %v1959_v38 = vadd.f32 %v1958_v4, %v1957_v50 }
 0x256   :  { %2352 = vrot.lane.b32.xlu0 %v2320_v8, %s3194_s2  ;;  %v2106_v60 = vrot.slane %v2105_v36, 2  ;;  %v2086_v40 = vrot.slane %v2085_v23, 1  ;;  %v2039_v57 = vadd.f32 %v2038_v55, %v2037_v7  ;;  %v2062_v42 = vrot.slane %v2061_v53, 2 }
 0x257   :  { %v2191_v10 = vsel %vm1717_vm1, %v2189_v1, 0.0  ;;  %v1939_v21 = vadd.f32 %v1938_v61, %v1937_v29  ;;  %v1997_v44 = vadd.f32 %v1996_v32, %v1995_v49  ;;  %v1979_v28 = vrot.slane %v1978_v58, 1 }
 0x258   :  { %v2171_v43 = vadd.f32 %v2170_v48, %v2169_v18  ;;  %v2147_v33 = vadd.f32 %v2146_v37, %v2145_v20  ;;  %v2213_v8 = vsel %vm1717_vm1, %v2211_v17, 0.0  ;;  %v2192_v45 = vrot.slane %v2191_v10, 4 }
 0x259   :  { %2356 = vrot.lane.b32.xlu1 %v2342_v27, %s3194_s2  ;;  %v2107_v27 = vadd.f32 %v2106_v60, %v2105_v36  ;;  %v1960_v63 = vrot.slane %v1959_v38, 1  ;;  %v2087_v0 = vadd.f32 %v2086_v40, %v2085_v23  ;;  %v2040_v11 = vrot.slane %v2039_v57, 1 }
 0x25a   :  { %v2063_v13 = vadd.f32 %v2062_v42, %v2061_v53  ;;  %v1940_v39 = vrot.slane %v1939_v21, 1  ;;  %v1998_v22 = vrot.slane %v1997_v44, 1  ;;  %v2214_v34 = vrot.slane %v2213_v8, 4 }
 0x25b   :  { %v1980_v12 = vadd.f32 %v1979_v28, %v1978_v58  ;;  %v2172_v6 = vrot.slane %v2171_v43, 2  ;;  %v2148_v26 = vrot.slane %v2147_v33, 2  ;;  %v2108_v14 = vrot.slane %v2107_v27, 1 }
 0x25c   :  { %v2193_v54 = vadd.f32 %v2192_v45, %v2191_v10  ;;  %v1961_v59 = vadd.f32 %v1960_v63, %v1959_v38  ;;  %v2088_v5 = vmul.f32 0.25, %v2087_v0  ;;  %v2041_v41 = vadd.f32 %v2040_v11, %v2039_v57 }
 0x25d   :  { %v2064_v30 = vrot.slane %v2063_v13, 1  ;;  %v1941_v9 = vadd.f32 %v1940_v39, %v1939_v21  ;;  %v1999_v56 = vadd.f32 %v1998_v22, %v1997_v44  ;;  %v2215_v16 = vadd.f32 %v2214_v34, %v2213_v8 }
 0x25e   :  { %v2253_v31 = vrot.slane %v4178_v62, 3  ;;  %v1981_v2 = vmul.f32 0.25, %v1980_v12  ;;  %v2173_v7 = vadd.f32 %v2172_v6, %v2171_v43  ;;  %v2149_v51 = vadd.f32 %v2148_v26, %v2147_v33 }
 0x25f   :  { %v2109_v49 = vadd.f32 %v2108_v14, %v2107_v27  ;;  %v2194_v15 = vrot.slane %v2193_v54, 2  ;;  %v2277_v4 = vrot.slane %v4198_v52, 3  ;;  %v1962_v36 = vmul.f32 0.25, %v1961_v59 }
 0x260   :  { %v2042_v20 = vmul.f32 0.25, %v2041_v41  ;;  %v2065_v23 = vadd.f32 %v2064_v30, %v2063_v13  ;;  %v1943_v55 = vmul.f32 0.25, %v1941_v9  ;;  %v2216_v1 = vrot.slane %v2215_v16, 2 }
 0x261   :  { %v2255_v61 = vsel %vm1717_vm1, %v2253_v31, 0.0  ;;  %v2000_v32 = vmul.f32 0.25, %v1999_v56  ;;  %v2174_v48 = vrot.slane %v2173_v7, 1  ;;  %v2150_v37 = vrot.slane %v2149_v51, 1 }
 0x262   :  { %v2110_v52 = vmul.f32 0.25, %v2109_v49  ;;  %v2195_v38 = vadd.f32 %v2194_v15, %v2193_v54  ;;  %v2279_v60 = vsel %vm1717_vm1, %v2277_v4, 0.0  ;;  %v2066_v42 = vmul.f32 0.25, %v2065_v23 }
 0x263   :  { %v2256_v10 = vrot.slane %v2255_v61, 4  ;;  %v2299_v21 = vrot.slane %v4206_v3, 3  ;;  %v2217_v33 = vadd.f32 %v2216_v1, %v2215_v16  ;;  %v2321_v8 = vrot.slane %v4213_v25, 3 }
 0x264   :  { %v2175_v63 = vadd.f32 %v2174_v48, %v2173_v7  ;;  %v2151_v0 = vadd.f32 %v2150_v37, %v2149_v51  ;;  %v2196_v13 = vrot.slane %v2195_v38, 1  ;;  %v2280_v22 = vrot.slane %v2279_v60, 4 }
 0x265   :  { %v2301_v34 = vsel %vm1717_vm1, %v2299_v21, 0.0  ;;  %v2218_v25 = vrot.slane %v2217_v33, 1  ;;  %v2257_v6 = vadd.f32 %v2256_v10, %v2255_v61  ;;  %v2323_v26 = vsel %vm1717_vm1, %v2321_v8, 0.0 }
 0x266   :  { %v2152_v14 = vmul.f32 0.25, %v2151_v0  ;;  %v2197_v59 = vadd.f32 %v2196_v13, %v2195_v38  ;;  %v2281_v30 = vadd.f32 %v2280_v22, %v2279_v60  ;;  %v2324_v9 = vrot.slane %v2323_v26, 4 }
 0x267   :  { %v2219_v16 = vadd.f32 %v2218_v25, %v2217_v33  ;;  %v2258_v31 = vrot.slane %v2257_v6, 2 }
 0x268   :  { %v2198_v7 = vmul.f32 0.25, %v2197_v59  ;;  %v2282_v49 = vrot.slane %v2281_v30, 2 }
 0x269   :  { %v2220_v15 = vmul.f32 0.25, %v2219_v16 }
 0x29b   :  { %v4250_v47 = vpop.permute.xlu1 %2017 }
 0x29c   :  { %v2014_v46 = vpop.permute.xlu0 %2013  ;;  %v2029_v3 = vsel %vm1138_vm0, %v1962_v36, %v4250_v47  ;;  %v2259_v36 = vadd.f32 %v2258_v31, %v2257_v6 }
 0x29d   :  { %v2028_v40 = vsel %vm1138_vm0, %v1943_v55, %v2014_v46 }
 0x29f   :  { %v2026_v35 = vpop.permute.xlu1 %2025 }
 0x2a0   :  { %v2022_v19 = vpop.permute.xlu0 %2021  ;;  %v2031_v46 = vsel %vm1138_vm0, %v2000_v32, %v2026_v35  ;;  %v2283_v32 = vadd.f32 %v2282_v49, %v2281_v30 }
 0x2a1   :  { %v2030_v18 = vsel %vm1138_vm0, %v1981_v2, %v2022_v19  ;;  %v2176_v19 = vmul.f32 0.25, %v2175_v63 }
 0x2a3   :  { %v2133_v50 = vpop.permute.xlu1 %2132 }
 0x2a4   :  { %v2141_v24 = vsel %vm1138_vm0, %v2088_v5, %v2133_v50  ;;  %v2302_v5 = vrot.slane %v2301_v34, 4 }
 0x2a5   :  { %v2369_v29 = vrot.slane %v2141_v24, 7 }
 0x2a6   :  { %v2125_v62 = vpop.permute.xlu0 %2124  ;;  %v2303_v51 = vadd.f32 %v2302_v5, %v2301_v34 }
 0x2a7   :  { %v4258_v53 = vsel %vm2264_vm4, %v2030_v18, %v2369_v29  ;;  %v2139_v58 = vsel %vm1138_vm0, %v2042_v20, %v2125_v62  ;;  %v2325_v18 = vadd.f32 %v2324_v9, %v2323_v26 }
 0x2a8   :  { %v2367_v17 = vrot.slane %v2139_v58, 7  ;;  %v2304_v62 = vrot.slane %v2303_v51, 2  ;;  %v2260_v58 = vrot.slane %v2259_v36, 1 }
 0x2a9   :  { %v2326_v48 = vrot.slane %v2325_v18, 2 }
 0x2aa   :  { %v2137_v57 = vpop.permute.xlu1 %2136  ;;  %v2399_v44 = vsel %vm2264_vm4, %v2028_v40, %v2367_v17  ;;  %v2305_v17 = vadd.f32 %v2304_v62, %v2303_v51  ;;  %v2261_v38 = vadd.f32 %v2260_v58, %v2259_v36 }
 0x2ab   :  { %v2142_v28 = vsel %vm1138_vm0, %v2110_v52, %v2137_v57  ;;  %v2129_v43 = vpop.permute.xlu0 %2128  ;;  %v2284_v52 = vrot.slane %v2283_v32, 1  ;;  %v2327_v60 = vadd.f32 %v2326_v48, %v2325_v18 }
 0x2ac   :  { %v2370_v27 = vrot.slane %v2142_v28, 7  ;;  %v2140_v45 = vsel %vm1138_vm0, %v2066_v42, %v2129_v43  ;;  %v2306_v40 = vrot.slane %v2305_v17, 1  ;;  %v2262_v42 = vmul.f32 0.25, %v2261_v38 }
 0x2ad   :  { %v2368_v11 = vrot.slane %v2140_v45, 7  ;;  %v2285_v57 = vadd.f32 %v2284_v52, %v2283_v32  ;;  %v2328_v10 = vrot.slane %v2327_v60, 1 }
 0x2ae   :  { %v2402_v39 = vsel %vm2264_vm4, %v2031_v46, %v2370_v27  ;;  %v2307_v28 = vadd.f32 %v2306_v40, %v2305_v17 }
 0x2af   :  { %v2400_v12 = vsel %vm2264_vm4, %v2029_v3, %v2368_v11  ;;  %v2286_v33 = vmul.f32 0.25, %v2285_v57 }
 0x2b0   :  { %v2235_v35 = vpop.permute.xlu0 %2234  ;;  %v2308_v63 = vmul.f32 0.25, %v2307_v28 }
 0x2b1   :  { %v2239_v54 = vpop.permute.xlu1 %2238  ;;  %v2249_v47 = vsel %vm1138_vm0, %v2152_v14, %v2235_v35 }
 0x2b2   :  { %v2250_v41 = vsel %vm1138_vm0, %v2176_v19, %v2239_v54  ;;  %v2379_v50 = vrot.slane %v2249_v47, 6 }
 0x2b3   :  { %v2380_v56 = vrot.slane %v2250_v41, 6 }
 0x2b4   :  { %v2403_v24 = vsel %vm2154_vm14, %v2399_v44, %v2379_v50 }
 0x2b5   :  { %v2404_v2 = vsel %vm2154_vm14, %v2400_v12, %v2380_v56  ;;  %v2243_v29 = vpop.permute.xlu0 %2242 }
 0x2b6   :  { %v2251_v4 = vsel %vm1138_vm0, %v2198_v7, %v2243_v29 }
 0x2b7   :  { %v2247_v20 = vpop.permute.xlu1 %2246  ;;  %v2381_v23 = vrot.slane %v2251_v4, 6 }
 0x2b8   :  { %v2252_v55 = vsel %vm1138_vm0, %v2220_v15, %v2247_v20 }
 0x2b9   :  { %v2382_v1 = vrot.slane %v2252_v55, 6  ;;  %v2405_v61 = vsel %vm2154_vm14, %v4258_v53, %v2381_v23  ;;  %v2329_v53 = vadd.f32 %v2328_v10, %v2327_v60 }
 0x2bb   :  { %v2406_v37 = vsel %vm2154_vm14, %v2402_v39, %v2382_v1  ;;  %v2330_v11 = vmul.f32 0.25, %v2329_v53 }
 0x2bf   :  { %v2345_v21 = vpop.permute.xlu0 %2344 }
 0x2c0   :  { %v2359_v44 = vsel %vm1138_vm0, %v2262_v42, %v2345_v21 }
 0x2c1   :  { %v2391_v43 = vrot.slane %v2359_v44, 5 }
 0x2c3   :  { %v2407_v27 = vsel %vm2044_vm8, %v2403_v24, %v2391_v43 }
 0x2c7   :  { %v2349_v8 = vpop.permute.xlu1 %2348 }
 0x2c8   :  { %v2360_v45 = vsel %vm1138_vm0, %v2286_v33, %v2349_v8  ;;  %v2353_v46 = vpop.permute.xlu0 %2352 }
 0x2c9   :  { %v2392_v0 = vrot.slane %v2360_v45, 5  ;;  %v2361_v13 = vsel %vm1138_vm0, %v2308_v63, %v2353_v46 }
 0x2ca   :  { %v2393_v39 = vrot.slane %v2361_v13, 5 }
 0x2cb   :  { %v2357_v3 = vpop.permute.xlu1 %2356  ;;  %v2408_v22 = vsel %vm2044_vm8, %v2404_v2, %v2392_v0 }
 0x2cc   :  { %v2362_v34 = vsel %vm1138_vm0, %v2330_v11, %v2357_v3  ;;  %v2415_v12 = vcombine.low %v2407_v27, %v2408_v22  ;;  %v2409_v6 = vsel %vm2044_vm8, %v2405_v61, %v2393_v39 }
 0x2cd   :  { %v2394_v25 = vrot.slane %v2362_v34, 5 }
 0x2ce   :  { %2419 = vst [vmem:[#allocation2] sm:$0xff] %v2415_v12 }
 0x2cf   :  { %v2410_v26 = vsel %vm2044_vm8, %v2406_v37, %v2394_v25 }
 0x2d0   :  { %v2416_v19 = vcombine.low %v2409_v6, %v2410_v26 }
 0x2d2   :  { %2420 = vst [vmem:[#allocation2 + $0x8] sm:$0xff] %v2416_v19 }
 0x2d3   :  { %3180 = shalt.err (!%p3177_p4)
}
 0x2d4   :  { %s3181_s28 = scalar_lea.hbm %s4309_s4, 256 }
 0x2d5   :  { %p3182_p5 = scmp.ne.s32.totalorder %s4309_s4, %s3181_s28  ;;  %p3185_p6 = scmp.lt.u32.totalorder %s3181_s28, %s4309_s4 }
 0x2d7   :  { %p3187_p7 = pnand %p3185_p6, %p3182_p5 }
 0x2d9   :  { %3190 = shalt.err (!%p3187_p7)
}
 0x2da   :  { %2430 = dma.vmem_to_hbm [thread:$0]  %s2428_s24, 256, %s4309_s4, [#allocation3]  }
 0x2db   :  { %3191 = dma.done.wait [#allocation3], 256  }
 0x2dc   :  { %3192 = vsyncadd [#allocation3], 4294967040 }
 0x2dd   :  { %2434 = vsyncpa [#allocation3], 1 }

</bundles_post_ra>
